<compile_context>
chip_gen: v7x
topology: tpu7x:2x2x1
jax: 0.10.0
libtpu: 0.0.40
codegen_flags: <defaults>
</compile_context>

<pallas_src>
import functools

import jax
import jax.numpy as jnp
from jax import lax
from jax.experimental import pallas as pl
from jax.experimental.pallas import tpu as pltpu


# ---------------------------------------------------------------------------
# TPU generation / VMEM introspection (best effort, with safe fallbacks)
# ---------------------------------------------------------------------------
def _device_kind():
    try:
        return jax.devices()[0].device_kind.lower()
    except Exception:
        return ""


_KIND = _device_kind()
_IS_V7 = ("v7" in _KIND) or ("tpu7" in _KIND) or ("7x" in _KIND)
_IS_V6 = "v6" in _KIND
_BF16_EXP = _IS_V6 or _IS_V7          # bf16 EUP exists on v6e / v7x only


def _vmem_capacity_bytes():
    try:
        cap = getattr(pltpu.get_tpu_info(), "vmem_capacity_bytes", None)
        if cap:
            return int(cap)
    except Exception:
        pass
    return (64 if _IS_V7 else 128) * 1024 * 1024


# ---------------------------------------------------------------------------
# Tiling helpers
# ---------------------------------------------------------------------------
def _pick_proj_tile(n, c_in, c_out, cap):
    """Lane-dense spatial tile for the projection + its VMEM budget."""
    budget = min(cap // 4, 32 * 1024 * 1024)
    cands = [t for t in (4096, 2048, 1024, 512, 256, 128) if t <= n and n % t == 0]
    if not cands:
        # TODO(synk): pad N = W*H to a multiple of 128 (needs masked attention
        # keys) so output stores are unmasked lane-dense vst.
        return n, budget
    tile = cands[-1]
    for t in cands:
        # x tile (f32, double-buffered) + bf16 output tiles (double-buffered)
        if 2 * (4 * c_in * t) + 2 * (2 * c_out * t) <= budget:
            tile = t
            break
    return tile, budget


def _pick_attn_tiles(heads, dp, n, batch, out_bytes, exp_bytes):
    """Choose (heads-per-step, key-block size, vmem_limit) from the VMEM budget."""
    cap = _vmem_capacity_bytes()
    budget = min(int(cap * 0.6), 64 * 1024 * 1024)      # ~38 MiB on v7x, 64 MiB on v5e/v6e

    # Key-block size: the largest lane-dense divisor of n whose s/p temporaries fit.
    cands = [c for c in (2048, 1024, 512, 256, 128) if c <= n and n % c == 0]
    if not cands:
        cands = [n]   # TODO(synk): pad N to a multiple of 128 (with key masking)

    def temp_bytes(kb):
        # s (f32) + p (exp dtype) + f32 copy of p for the l-sum
        return (4 + exp_bytes + 4) * kb * n

    nkb = cands[-1]
    for c in cands:
        if temp_bytes(c) <= budget // 3:
            nkb = c
            break

    # Per-head resident footprint (includes the previously-missing output block).
    per_head = (4 * dp * n               # q full-N block      (bf16, double-buffered)
                + 8 * dp * nkb           # [q;k] key block     (bf16, double-buffered)
                + 4 * dp * nkb           # v key block         (bf16, double-buffered)
                + 4 * dp * n             # pos block           (bf16, double-buffered)
                + 4 * dp * n             # [pos;q] scratch     (bf16)
                + 4 * dp * n             # f32 accumulator scratch
                + 2 * out_bytes * dp * n  # output block        (double-buffered)
                + 2 * 4 * n)             # m / l scratch       (f32)

    min_par = 2 if _IS_V7 else 1          # keep both v7x TensorCores busy
    min_par = min(min_par, heads * batch)
    hg = 1
    for cand in range(heads, 0, -1):
        if heads % cand:
            continue
        if (heads // cand) * batch < min_par:
            continue
        if cand * per_head + temp_bytes(nkb) > budget:
            continue
        hg = cand
        break

    need = hg * per_head + temp_bytes(nkb)
    limit = min(int(cap * 0.9), max(budget, need) + 16 * 1024 * 1024)
    return hg, nkb, limit


# ---------------------------------------------------------------------------
# Fused projection:
#   qk[b, 2*Cp, n] = W_qk @ x[b] + b_qk     (per-head interleaved [q_h ; k_h])
#   v [b,   Cp, n] = W_v  @ x[b] + b_v
# bf16 MXU inputs, f32 accumulation, bf16 writeback; x is read from HBM once.
# ---------------------------------------------------------------------------
def _proj_kernel(x_ref, wqk_ref, bqk_ref, wv_ref, bv_ref, oqk_ref, ov_ref):
    xb = x_ref[...].astype(jnp.bfloat16)
    yqk = jnp.dot(wqk_ref[...], xb, preferred_element_type=jnp.float32) + bqk_ref[...]
    yv = jnp.dot(wv_ref[...], xb, preferred_element_type=jnp.float32) + bv_ref[...]
    oqk_ref[...] = yqk.astype(oqk_ref.dtype)
    ov_ref[...] = yv.astype(ov_ref.dtype)


def qkv_projection(x_flat, w_qk, b_qk, w_v, b_v):
    """x_flat: (B, C, N) f32; returns (qk (B, 2Cp, N), v (B, Cp, N)) in bf16."""
    B, C, N = x_flat.shape
    Cqk = w_qk.shape[0]
    Cv = w_v.shape[0]
    cap = _vmem_capacity_bytes()
    tn, budget = _pick_proj_tile(N, C, Cqk + Cv, cap)
    w_bytes = 2 * 2 * (Cqk + Cv) * C + 4 * (Cqk + Cv)
    limit = min(int(cap * 0.9), budget + w_bytes + 8 * 1024 * 1024)

    return pl.pallas_call(
        _proj_kernel,
        out_shape=(jax.ShapeDtypeStruct((B, Cqk, N), jnp.bfloat16),
                   jax.ShapeDtypeStruct((B, Cv, N), jnp.bfloat16)),
        grid=(B, N // tn),
        in_specs=[
            pl.BlockSpec((None, C, tn), lambda b, n: (b, 0, n)),
            pl.BlockSpec((Cqk, C), lambda b, n: (0, 0)),
            pl.BlockSpec((Cqk, 1), lambda b, n: (0, 0)),
            pl.BlockSpec((Cv, C), lambda b, n: (0, 0)),
            pl.BlockSpec((Cv, 1), lambda b, n: (0, 0)),
        ],
        out_specs=(
            pl.BlockSpec((None, Cqk, tn), lambda b, n: (b, 0, n)),
            pl.BlockSpec((None, Cv, tn), lambda b, n: (b, 0, n)),
        ),
        compiler_params=pltpu.CompilerParams(
            dimension_semantics=("parallel", "parallel"),
            vmem_limit_bytes=limit,
        ),
    )(x_flat, w_qk, b_qk, w_v, b_v)


# ---------------------------------------------------------------------------
# Attention kernel.  Per head:
#   energy[n, m] = sum_d q[d,n] k[d,m] + sum_d pos[d,n] q[d,m]
#   out[d, n]    = sum_m v[d,m] softmax_m(energy)[n, m]
# Internally s[m, n] = energy[n, m] is computed as ONE 2*dp-deep contraction:
#   LHS = [q_blk ; k_blk] (2dp, nkb)   (contiguous key block of the qk array)
#   RHS = [pos   ; q    ] (2dp, N)     (staged once per (g, b) in VMEM scratch)
# Online softmax (m/l/acc scratch) streams over key blocks.
# ---------------------------------------------------------------------------
def _attn_kernel(qf_ref, qk_ref, v_ref, pos_ref, o_ref,
                 qp_ref, m_ref, l_ref, acc_ref, *, dp, exp_dtype):
    hg = v_ref.shape[0]
    t = pl.program_id(2)

    @pl.when(t == 0)
    def _init():
        m_ref[...] = jnp.full_like(m_ref, -jnp.inf)
        l_ref[...] = jnp.zeros_like(l_ref)
        acc_ref[...] = jnp.zeros_like(acc_ref)
        # Stage the fused-contraction RHS = [pos ; q] once per (head-group, batch).
        # dp is a multiple of 16, so both stores are bf16-tile aligned.
        qp_ref[:, :dp, :] = pos_ref[...]
        qp_ref[:, dp:, :] = qf_ref[...]

    def head_body(h, carry):
        lhs = qk_ref[h]                       # (2dp, nkb) bf16 = [q_blk ; k_blk]
        rhs = qp_ref[h]                       # (2dp, N)   bf16 = [pos ; q]
        # s[m, n] = energy[n, m + block_offset], single 2dp-deep MXU contraction.
        s = lax.dot_general(lhs, rhs, (((0,), (0,)), ((), ())),
                            preferred_element_type=jnp.float32)     # (nkb, N)

        m_prev = m_ref[h]                                            # (1, N)
        m_new = jnp.maximum(m_prev, jnp.max(s, axis=0, keepdims=True))
        alpha = jnp.exp(m_prev - m_new)                              # (1, N)
        p = jnp.exp((s - m_new).astype(exp_dtype))                   # bf16 EUP on v6e/v7x
        l_ref[h] = alpha * l_ref[h] + jnp.sum(
            p.astype(jnp.float32), axis=0, keepdims=True)            # l stays f32
        acc_ref[h] = alpha * acc_ref[h] + jnp.dot(
            v_ref[h], p.astype(jnp.bfloat16), preferred_element_type=jnp.float32)
        m_ref[h] = m_new
        return carry

    lax.fori_loop(0, hg, head_body, 0)

    @pl.when(t == pl.num_programs(2) - 1)
    def _finalize():
        inv_l = pl.reciprocal(l_ref[...], approx=True)               # EUP slot
        o_ref[...] = (acc_ref[...] * inv_l).astype(o_ref.dtype)


def mhsa_attention(qk, v, pos, *, out_dtype=jnp.bfloat16):
    """qk: (B, heads, 2dp, N) bf16, v: (B, heads, dp, N) bf16, pos: (1, heads, dp, N) bf16."""
    B, heads, dp2, N = qk.shape
    dp = dp2 // 2
    exp_dtype = jnp.bfloat16 if _BF16_EXP else jnp.float32
    hg, nkb, vmem_limit = _pick_attn_tiles(
        heads, dp, N, B,
        jnp.dtype(out_dtype).itemsize, jnp.dtype(exp_dtype).itemsize)
    grid = (heads // hg, B, N // nkb)

    qf_spec = pl.BlockSpec((None, hg, dp, N), lambda g, b, t: (b, g, 0, 0))      # q rows only
    qk_blk_spec = pl.BlockSpec((None, hg, 2 * dp, nkb), lambda g, b, t: (b, g, 0, t))
    v_spec = pl.BlockSpec((None, hg, dp, nkb), lambda g, b, t: (b, g, 0, t))
    pos_spec = pl.BlockSpec((None, hg, dp, N), lambda g, b, t: (0, g, 0, 0))
    out_spec = pl.BlockSpec((None, hg, dp, N), lambda g, b, t: (b, g, 0, 0))

    kernel = functools.partial(_attn_kernel, dp=dp, exp_dtype=exp_dtype)
    return pl.pallas_call(
        kernel,
        out_shape=jax.ShapeDtypeStruct((B, heads, dp, N), out_dtype),
        grid=grid,
        in_specs=[qf_spec, qk_blk_spec, v_spec, pos_spec],
        out_specs=out_spec,
        scratch_shapes=[
            pltpu.VMEM((hg, 2 * dp, N), jnp.bfloat16),   # [pos ; q] fused RHS
            pltpu.VMEM((hg, 1, N), jnp.float32),         # running max  m
            pltpu.VMEM((hg, 1, N), jnp.float32),         # running sum  l
            pltpu.VMEM((hg, dp, N), jnp.float32),        # output accumulator
        ],
        compiler_params=pltpu.CompilerParams(
            dimension_semantics=("parallel", "parallel", "arbitrary"),
            vmem_limit_bytes=vmem_limit,
        ),
    )(qk, qk, v, pos)


# ---------------------------------------------------------------------------
# Full forward (glue in plain JAX: weight stacking / head-dim padding / reshapes)
# ---------------------------------------------------------------------------
def mhsa_forward(x, params, heads, out_dtype=jnp.bfloat16):
    B, C, W, H = x.shape
    N = W * H
    d = C // heads
    dp = -(-d // 16) * 16             # pad head dim to the bf16 sublane packing
    Cp = heads * dp

    xf = x.reshape(B, C, N)

    def per_head(w, b):
        w = w.reshape(heads, d, C)
        b = b.reshape(heads, d, 1)
        if dp != d:
            w = jnp.pad(w, ((0, 0), (0, dp - d), (0, 0)))
            b = jnp.pad(b, ((0, 0), (0, dp - d), (0, 0)))
        return w, b

    wq, bq = per_head(params["wq"], params["bq"])
    wk, bk = per_head(params["wk"], params["bk"])
    wv, bv = per_head(params["wv"], params["bv"])

    # Per-head interleaved [q_h ; k_h] rows -> the attention LHS is a contiguous
    # 2*dp block (enables the fused 2dp-deep energy contraction).
    w_qk = jnp.concatenate([wq, wk], axis=1).reshape(2 * Cp, C).astype(jnp.bfloat16)
    b_qk = jnp.concatenate([bq, bk], axis=1).reshape(2 * Cp, 1)
    w_v = wv.reshape(Cp, C).astype(jnp.bfloat16)
    b_v = bv.reshape(Cp, 1)

    qk, v = qkv_projection(xf, w_qk, b_qk, w_v, b_v)      # bf16, x read once
    qk = qk.reshape(B, heads, 2 * dp, N)                  # contiguous reshapes
    v = v.reshape(B, heads, dp, N)

    pos = (params["rel_h"] + params["rel_w"]).reshape(1, heads, d, N)
    if dp != d:
        pos = jnp.pad(pos, ((0, 0), (0, 0), (0, dp - d), (0, 0)))
    pos = pos.astype(jnp.bfloat16)                        # pre-cast once (half DMA)

    out = mhsa_attention(qk, v, pos, out_dtype=out_dtype)  # (B, heads, dp, N)
    if dp != d:
        out = out[:, :, :d, :]
    return out.reshape(B, C, W, H)


# ---------------------------------------------------------------------------
# Pure-JAX reference (mirrors the PyTorch forward).  With mxu_dtype=bf16 it also
# mirrors the kernel's precision policy (bf16 MXU inputs everywhere, f32 accum).
# ---------------------------------------------------------------------------
def mhsa_ref(x, params, heads, mxu_dtype=None):
    B, C, W, H = x.shape
    N = W * H
    d = C // heads
    xf = x.reshape(B, C, N)
    hp = lax.Precision.HIGHEST
    f32 = jnp.float32

    if mxu_dtype is not None:
        xp = xf.astype(mxu_dtype)

        def proj(w, b):
            y = jnp.einsum("oc,bcn->bon", w.astype(mxu_dtype), xp,
                           precision=hp, preferred_element_type=f32) + b[None]
            return y.astype(mxu_dtype).astype(f32)
    else:
        def proj(w, b):
            return jnp.einsum("oc,bcn->bon", w, xf, precision=hp) + b[None]

    q = proj(params["wq"], params["bq"]).reshape(B, heads, d, N)
    k = proj(params["wk"], params["bk"]).reshape(B, heads, d, N)
    v = proj(params["wv"], params["bv"]).reshape(B, heads, d, N)
    pos = (params["rel_h"] + params["rel_w"]).reshape(heads, d, N)

    if mxu_dtype is not None:
        q, k, v, pos = (t.astype(mxu_dtype) for t in (q, k, v, pos))

    cc = jnp.einsum("bhdn,bhdm->bhnm", q, k, precision=hp, preferred_element_type=f32)
    cp = jnp.einsum("hdn,bhdm->bhnm", pos, q, precision=hp, preferred_element_type=f32)
    attn = jax.nn.softmax(cc + cp, axis=-1)
    if mxu_dtype is not None:
        attn = attn.astype(mxu_dtype)
    out = jnp.einsum("bhdm,bhnm->bhdn", v, attn, precision=hp, preferred_element_type=f32)
    return out.reshape(B, C, W, H)


if __name__ == "__main__":
    B, C, heads = 2, 64, 4
    W = H = 8                      # spatial; N = 64
    d = C // heads                 # 16 -> exercises the aligned fused-contraction path

    key = jax.random.PRNGKey(0)
    kx, kwq, kbq, kwk, kbk, kwv, kbv, krh, krw = jax.random.split(key, 9)

    scale = 1.0 / jnp.sqrt(jnp.float32(C))
    params = {
        "wq": jax.random.normal(kwq, (C, C), jnp.float32) * scale,
        "bq": jax.random.normal(kbq, (C, 1), jnp.float32) * 0.1,
        "wk": jax.random.normal(kwk, (C, C), jnp.float32) * scale,
        "bk": jax.random.normal(kbk, (C, 1), jnp.float32) * 0.1,
        "wv": jax.random.normal(kwv, (C, C), jnp.float32) * scale,
        "bv": jax.random.normal(kbv, (C, 1), jnp.float32) * 0.1,
        "rel_h": jax.random.normal(krh, (1, heads, d, 1, H), jnp.float32),
        "rel_w": jax.random.normal(krw, (1, heads, d, W, 1), jnp.float32),
    }
    x = jax.random.normal(kx, (B, C, W, H), jnp.float32)

    fwd = jax.jit(functools.partial(mhsa_forward, heads=heads))
    out = jax.block_until_ready(fwd(x, params))
    assert out.shape == (B, C, W, H), out.shape
    out_f32 = out.astype(jnp.float32)

    # (1) Validate against a reference that uses the kernel's exact mixed-precision
    #     policy (bf16 MXU inputs for the projection AND the attention, f32 accum).
    ref_matched = mhsa_ref(x, params, heads, mxu_dtype=jnp.bfloat16)
    if not jnp.allclose(out_f32, ref_matched, rtol=2e-2, atol=3e-2):
        err = float(jnp.max(jnp.abs(out_f32 - ref_matched)))
        raise ValueError(f"Pallas MHSA mismatch vs bf16-matched reference, max abs err = {err}")

    # (2) Sanity-check against the full-f32 PyTorch-faithful reference (looser
    #     tolerance: the kernel deliberately runs the MXU / writeback in bf16).
    ref_f32 = mhsa_ref(x, params, heads)
    if not jnp.allclose(out_f32, ref_f32, rtol=1e-1, atol=1e-1):
        err = float(jnp.max(jnp.abs(out_f32 - ref_f32)))
        raise ValueError(f"Pallas MHSA mismatch vs f32 reference, max abs err = {err}")

    print("KERNEL_OK")
</pallas_src>

<mosaic_0001>
module attributes {stable_mosaic.version = 11 : i64} {
  func.func @_proj_kernel(%arg0: i32, %arg1: i32, %arg2: memref<1x64x64xf32, #tpu.memory_space<vmem>>, %arg3: memref<128x64xbf16, #tpu.memory_space<vmem>>, %arg4: memref<128x1xf32, #tpu.memory_space<vmem>>, %arg5: memref<64x64xbf16, #tpu.memory_space<vmem>>, %arg6: memref<64x1xf32, #tpu.memory_space<vmem>>, %arg7: memref<1x128x64xbf16, #tpu.memory_space<vmem>>, %arg8: memref<1x64x64xbf16, #tpu.memory_space<vmem>>) attributes {dimension_semantics = [#tpu.dimension_semantics<parallel>, #tpu.dimension_semantics<parallel>], iteration_bounds = array<i64: 2, 1>, scalar_prefetch = 0 : i64, scratch_operands = 0 : i64, tpu.core_type = #tpu.core_type<tc>, window_params = [{transform_indices = @transform_0, window_bounds = array<i64: 1, 64, 64>}, {pipeline_mode = #tpu.pipeline_mode<synchronous>, transform_indices = @transform_1, window_bounds = array<i64: 128, 64>}, {pipeline_mode = #tpu.pipeline_mode<synchronous>, transform_indices = @transform_2, window_bounds = array<i64: 128, 1>}, {pipeline_mode = #tpu.pipeline_mode<synchronous>, transform_indices = @transform_3, window_bounds = array<i64: 64, 64>}, {pipeline_mode = #tpu.pipeline_mode<synchronous>, transform_indices = @transform_4, window_bounds = array<i64: 64, 1>}, {transform_indices = @transform_5, window_bounds = array<i64: 1, 128, 64>}, {transform_indices = @transform_6, window_bounds = array<i64: 1, 64, 64>}]} {
    %c0 = arith.constant 0 : index
    %c0_0 = arith.constant 0 : index
    %c0_1 = arith.constant 0 : index
    %0 = vector.load %arg2[%c0, %c0_0, %c0_1] : memref<1x64x64xf32, #tpu.memory_space<vmem>>, vector<1x64x64xf32>
    %1 = vector.shape_cast %0 : vector<1x64x64xf32> to vector<64x64xf32>
    %2 = arith.truncf %1 : vector<64x64xf32> to vector<64x64xbf16>
    %c0_2 = arith.constant 0 : index
    %c0_3 = arith.constant 0 : index
    %3 = vector.load %arg3[%c0_2, %c0_3] : memref<128x64xbf16, #tpu.memory_space<vmem>>, vector<128x64xbf16>
    %cst = arith.constant dense<0.000000e+00> : vector<128x64xf32>
    %4 = tpu.matmul %3, %2, %cst {dimension_numbers = #tpu.dot_dimension_numbers<[1], [0], [0], [1], [0, 0, 1, 1], [], []>} : vector<128x64xbf16>, vector<64x64xbf16>, vector<128x64xf32> -> vector<128x64xf32>
    %c0_4 = arith.constant 0 : index
    %c0_5 = arith.constant 0 : index
    %5 = vector.load %arg4[%c0_4, %c0_5] : memref<128x1xf32, #tpu.memory_space<vmem>>, vector<128x1xf32>
    %6 = vector.broadcast %5 : vector<128x1xf32> to vector<128x64xf32>
    %7 = arith.addf %4, %6 : vector<128x64xf32>
    %c0_6 = arith.constant 0 : index
    %c0_7 = arith.constant 0 : index
    %8 = vector.load %arg5[%c0_6, %c0_7] : memref<64x64xbf16, #tpu.memory_space<vmem>>, vector<64x64xbf16>
    %cst_8 = arith.constant dense<0.000000e+00> : vector<64x64xf32>
    %9 = tpu.matmul %8, %2, %cst_8 {dimension_numbers = #tpu.dot_dimension_numbers<[1], [0], [0], [1], [0, 0, 1, 1], [], []>} : vector<64x64xbf16>, vector<64x64xbf16>, vector<64x64xf32> -> vector<64x64xf32>
    %c0_9 = arith.constant 0 : index
    %c0_10 = arith.constant 0 : index
    %10 = vector.load %arg6[%c0_9, %c0_10] : memref<64x1xf32, #tpu.memory_space<vmem>>, vector<64x1xf32>
    %11 = vector.broadcast %10 : vector<64x1xf32> to vector<64x64xf32>
    %12 = arith.addf %9, %11 : vector<64x64xf32>
    %13 = arith.truncf %7 : vector<128x64xf32> to vector<128x64xbf16>
    %c0_11 = arith.constant 0 : index
    %c0_12 = arith.constant 0 : index
    %c0_13 = arith.constant 0 : index
    %14 = vector.load %arg7[%c0_11, %c0_12, %c0_13] : memref<1x128x64xbf16, #tpu.memory_space<vmem>>, vector<1x128x64xbf16>
    %15 = vector.shape_cast %14 : vector<1x128x64xbf16> to vector<128x64xbf16>
    %16 = vector.shape_cast %13 : vector<128x64xbf16> to vector<1x128x64xbf16>
    tpu.vector_store %arg7[%c0_11, %c0_12, %c0_13], %16 {strides = array<i32>} : memref<1x128x64xbf16, #tpu.memory_space<vmem>>, vector<1x128x64xbf16>,
    %17 = arith.truncf %12 : vector<64x64xf32> to vector<64x64xbf16>
    %c0_14 = arith.constant 0 : index
    %c0_15 = arith.constant 0 : index
    %c0_16 = arith.constant 0 : index
    %18 = vector.load %arg8[%c0_14, %c0_15, %c0_16] : memref<1x64x64xbf16, #tpu.memory_space<vmem>>, vector<1x64x64xbf16>
    %19 = vector.shape_cast %18 : vector<1x64x64xbf16> to vector<64x64xbf16>
    %20 = vector.shape_cast %17 : vector<64x64xbf16> to vector<1x64x64xbf16>
    tpu.vector_store %arg8[%c0_14, %c0_15, %c0_16], %20 {strides = array<i32>} : memref<1x64x64xbf16, #tpu.memory_space<vmem>>, vector<1x64x64xbf16>,
    return
  }
  func.func @transform_0(%arg0: i32, %arg1: i32) -> (i32, i32, i32) {
    %c0_i32 = arith.constant 0 : i32
    %c0_i32_0 = arith.constant 0 : i32
    return %arg0, %c0_i32, %arg1 : i32, i32, i32
  }
  func.func @transform_1(%arg0: i32, %arg1: i32) -> (i32, i32) {
    %c0_i32 = arith.constant 0 : i32
    %c0_i32_0 = arith.constant 0 : i32
    %c0_i32_1 = arith.constant 0 : i32
    return %c0_i32, %c0_i32_0 : i32, i32
  }
  func.func @transform_2(%arg0: i32, %arg1: i32) -> (i32, i32) {
    %c0_i32 = arith.constant 0 : i32
    %c0_i32_0 = arith.constant 0 : i32
    %c0_i32_1 = arith.constant 0 : i32
    return %c0_i32, %c0_i32_0 : i32, i32
  }
  func.func @transform_3(%arg0: i32, %arg1: i32) -> (i32, i32) {
    %c0_i32 = arith.constant 0 : i32
    %c0_i32_0 = arith.constant 0 : i32
    %c0_i32_1 = arith.constant 0 : i32
    return %c0_i32, %c0_i32_0 : i32, i32
  }
  func.func @transform_4(%arg0: i32, %arg1: i32) -> (i32, i32) {
    %c0_i32 = arith.constant 0 : i32
    %c0_i32_0 = arith.constant 0 : i32
    %c0_i32_1 = arith.constant 0 : i32
    return %c0_i32, %c0_i32_0 : i32, i32
  }
  func.func @transform_5(%arg0: i32, %arg1: i32) -> (i32, i32, i32) {
    %c0_i32 = arith.constant 0 : i32
    %c0_i32_0 = arith.constant 0 : i32
    return %arg0, %c0_i32, %arg1 : i32, i32, i32
  }
  func.func @transform_6(%arg0: i32, %arg1: i32) -> (i32, i32, i32) {
    %c0_i32 = arith.constant 0 : i32
    %c0_i32_0 = arith.constant 0 : i32
    return %arg0, %c0_i32, %arg1 : i32, i32, i32
  }
}

module attributes {stable_mosaic.version = 11 : i64} {
  func.func @_attn_kernel(%arg0: i32, %arg1: i32, %arg2: i32, %arg3: memref<1x4x16x64xbf16, #tpu.memory_space<vmem>>, %arg4: memref<1x4x32x64xbf16, #tpu.memory_space<vmem>>, %arg5: memref<1x4x16x64xbf16, #tpu.memory_space<vmem>>, %arg6: memref<1x4x16x64xbf16, #tpu.memory_space<vmem>>, %arg7: memref<1x4x16x64xbf16, #tpu.memory_space<vmem>>, %arg8: memref<4x32x64xbf16, #tpu.memory_space<vmem>>, %arg9: memref<4x1x64xf32, #tpu.memory_space<vmem>>, %arg10: memref<4x1x64xf32, #tpu.memory_space<vmem>>, %arg11: memref<4x16x64xf32, #tpu.memory_space<vmem>>) attributes {dimension_semantics = [#tpu.dimension_semantics<parallel>, #tpu.dimension_semantics<parallel>, #tpu.dimension_semantics<arbitrary>], iteration_bounds = array<i64: 1, 2, 1>, scalar_prefetch = 0 : i64, scratch_operands = 4 : i64, tpu.core_type = #tpu.core_type<tc>, window_params = [{transform_indices = @transform_0, window_bounds = array<i64: 1, 4, 16, 64>}, {transform_indices = @transform_1, window_bounds = array<i64: 1, 4, 32, 64>}, {transform_indices = @transform_2, window_bounds = array<i64: 1, 4, 16, 64>}, {transform_indices = @transform_3, window_bounds = array<i64: 1, 4, 16, 64>}, {transform_indices = @transform_4, window_bounds = array<i64: 1, 4, 16, 64>}]} {
    %c0_i32 = arith.constant 0 : i32
    %0 = arith.cmpi eq, %arg2, %c0_i32 : i32
    %1 = arith.extui %0 : i1 to i32
    %c0_i32_0 = arith.constant 0 : i32
    %2 = arith.cmpi ne, %1, %c0_i32_0 : i32
    scf.if %2 {
      %cst = arith.constant 0xFF800000 : f32
      %7 = vector.broadcast %cst : f32 to vector<4x1x64xf32>
      %c0 = arith.constant 0 : index
      %c0_5 = arith.constant 0 : index
      %c0_6 = arith.constant 0 : index
      %8 = vector.load %arg9[%c0, %c0_5, %c0_6] : memref<4x1x64xf32, #tpu.memory_space<vmem>>, vector<4x1x64xf32>
      tpu.vector_store %arg9[%c0, %c0_5, %c0_6], %7 {strides = array<i32>} : memref<4x1x64xf32, #tpu.memory_space<vmem>>, vector<4x1x64xf32>,
      %cst_7 = arith.constant 0.000000e+00 : f32
      %9 = vector.broadcast %cst_7 : f32 to vector<4x1x64xf32>
      %c0_8 = arith.constant 0 : index
      %c0_9 = arith.constant 0 : index
      %c0_10 = arith.constant 0 : index
      %10 = vector.load %arg10[%c0_8, %c0_9, %c0_10] : memref<4x1x64xf32, #tpu.memory_space<vmem>>, vector<4x1x64xf32>
      tpu.vector_store %arg10[%c0_8, %c0_9, %c0_10], %9 {strides = array<i32>} : memref<4x1x64xf32, #tpu.memory_space<vmem>>, vector<4x1x64xf32>,
      %cst_11 = arith.constant 0.000000e+00 : f32
      %11 = vector.broadcast %cst_11 : f32 to vector<4x16x64xf32>
      %c0_12 = arith.constant 0 : index
      %c0_13 = arith.constant 0 : index
      %c0_14 = arith.constant 0 : index
      %12 = vector.load %arg11[%c0_12, %c0_13, %c0_14] : memref<4x16x64xf32, #tpu.memory_space<vmem>>, vector<4x16x64xf32>
      tpu.vector_store %arg11[%c0_12, %c0_13, %c0_14], %11 {strides = array<i32>} : memref<4x16x64xf32, #tpu.memory_space<vmem>>, vector<4x16x64xf32>,
      %c0_15 = arith.constant 0 : index
      %c0_16 = arith.constant 0 : index
      %c0_17 = arith.constant 0 : index
      %c0_18 = arith.constant 0 : index
      %13 = vector.load %arg6[%c0_15, %c0_16, %c0_17, %c0_18] : memref<1x4x16x64xbf16, #tpu.memory_space<vmem>>, vector<1x4x16x64xbf16>
      %14 = vector.shape_cast %13 : vector<1x4x16x64xbf16> to vector<4x16x64xbf16>
      %c0_19 = arith.constant 0 : index
      %c0_20 = arith.constant 0 : index
      %c0_21 = arith.constant 0 : index
      %15 = vector.load %arg8[%c0_19, %c0_20, %c0_21] : memref<4x32x64xbf16, #tpu.memory_space<vmem>>, vector<4x16x64xbf16>
      tpu.vector_store %arg8[%c0_19, %c0_20, %c0_21], %14 {strides = array<i32>} : memref<4x32x64xbf16, #tpu.memory_space<vmem>>, vector<4x16x64xbf16>,
      %c0_22 = arith.constant 0 : index
      %c0_23 = arith.constant 0 : index
      %c0_24 = arith.constant 0 : index
      %c0_25 = arith.constant 0 : index
      %16 = vector.load %arg3[%c0_22, %c0_23, %c0_24, %c0_25] : memref<1x4x16x64xbf16, #tpu.memory_space<vmem>>, vector<1x4x16x64xbf16>
      %17 = vector.shape_cast %16 : vector<1x4x16x64xbf16> to vector<4x16x64xbf16>
      %c0_26 = arith.constant 0 : index
      %c16 = arith.constant 16 : index
      %c0_27 = arith.constant 0 : index
      %18 = vector.load %arg8[%c0_26, %c16, %c0_27] : memref<4x32x64xbf16, #tpu.memory_space<vmem>>, vector<4x16x64xbf16>
      tpu.vector_store %arg8[%c0_26, %c16, %c0_27], %17 {strides = array<i32>} : memref<4x32x64xbf16, #tpu.memory_space<vmem>>, vector<4x16x64xbf16>,
    } else {
    }
    %c0_i32_1 = arith.constant 0 : i32
    %c4_i32 = arith.constant 4 : i32
    %3 = arith.addi %c0_i32_1, %c4_i32 : i32
    %c1_i32 = arith.constant 1 : i32
    scf.for %arg12 = %c0_i32_1 to %3 step %c1_i32  : i32 {
      %c0 = arith.constant 0 : index
      %7 = arith.index_cast %arg12 : i32 to index
      %c0_5 = arith.constant 0 : index
      %c0_6 = arith.constant 0 : index
      %8 = vector.load %arg4[%c0, %7, %c0_5, %c0_6] : memref<1x4x32x64xbf16, #tpu.memory_space<vmem>>, vector<1x1x32x64xbf16>
      %9 = vector.shape_cast %8 : vector<1x1x32x64xbf16> to vector<32x64xbf16>
      %10 = arith.index_cast %arg12 : i32 to index
      %c0_7 = arith.constant 0 : index
      %c0_8 = arith.constant 0 : index
      %11 = vector.load %arg8[%10, %c0_7, %c0_8] : memref<4x32x64xbf16, #tpu.memory_space<vmem>>, vector<1x32x64xbf16>
      %12 = vector.shape_cast %11 : vector<1x32x64xbf16> to vector<32x64xbf16>
      %cst = arith.constant dense<0.000000e+00> : vector<64x64xf32>
      %13 = tpu.matmul %9, %12, %cst {dimension_numbers = #tpu.dot_dimension_numbers<[0], [0], [1], [1], [0, 1, 1, 1], [], []>} : vector<32x64xbf16>, vector<32x64xbf16>, vector<64x64xf32> -> vector<64x64xf32>
      %14 = arith.index_cast %arg12 : i32 to index
      %c0_9 = arith.constant 0 : index
      %c0_10 = arith.constant 0 : index
      %15 = vector.load %arg9[%14, %c0_9, %c0_10] : memref<4x1x64xf32, #tpu.memory_space<vmem>>, vector<1x1x64xf32>
      %16 = vector.shape_cast %15 : vector<1x1x64xf32> to vector<1x64xf32>
      %cst_11 = arith.constant dense<0xFF800000> : vector<64xf32>
      %17 = vector.multi_reduction <maximumf>, %13, %cst_11 [0] : vector<64x64xf32> to vector<64xf32>
      %18 = vector.shape_cast %17 : vector<64xf32> to vector<1x64xf32>
      %19 = arith.maximumf %16, %18 : vector<1x64xf32>
      %20 = arith.subf %16, %19 : vector<1x64xf32>
      %21 = math.exp %20 : vector<1x64xf32>
      %22 = vector.broadcast %19 : vector<1x64xf32> to vector<64x64xf32>
      %23 = arith.subf %13, %22 : vector<64x64xf32>
      %24 = math.exp %23 : vector<64x64xf32>
      %25 = arith.index_cast %arg12 : i32 to index
      %c0_12 = arith.constant 0 : index
      %c0_13 = arith.constant 0 : index
      %26 = vector.load %arg10[%25, %c0_12, %c0_13] : memref<4x1x64xf32, #tpu.memory_space<vmem>>, vector<1x1x64xf32>
      %27 = vector.shape_cast %26 : vector<1x1x64xf32> to vector<1x64xf32>
      %28 = arith.mulf %21, %27 : vector<1x64xf32>
      %cst_14 = arith.constant dense<0.000000e+00> : vector<64xf32>
      %29 = vector.multi_reduction <add>, %24, %cst_14 [0] : vector<64x64xf32> to vector<64xf32>
      %30 = vector.shape_cast %29 : vector<64xf32> to vector<1x64xf32>
      %31 = arith.addf %28, %30 : vector<1x64xf32>
      %32 = arith.index_cast %arg12 : i32 to index
      %c0_15 = arith.constant 0 : index
      %c0_16 = arith.constant 0 : index
      %33 = vector.load %arg10[%32, %c0_15, %c0_16] : memref<4x1x64xf32, #tpu.memory_space<vmem>>, vector<1x1x64xf32>
      %34 = vector.shape_cast %33 : vector<1x1x64xf32> to vector<1x64xf32>
      %35 = vector.shape_cast %31 : vector<1x64xf32> to vector<1x1x64xf32>
      tpu.vector_store %arg10[%32, %c0_15, %c0_16], %35 {strides = array<i32>} : memref<4x1x64xf32, #tpu.memory_space<vmem>>, vector<1x1x64xf32>,
      %36 = arith.index_cast %arg12 : i32 to index
      %c0_17 = arith.constant 0 : index
      %c0_18 = arith.constant 0 : index
      %37 = vector.load %arg11[%36, %c0_17, %c0_18] : memref<4x16x64xf32, #tpu.memory_space<vmem>>, vector<1x16x64xf32>
      %38 = vector.shape_cast %37 : vector<1x16x64xf32> to vector<16x64xf32>
      %39 = vector.broadcast %21 : vector<1x64xf32> to vector<16x64xf32>
      %40 = arith.mulf %39, %38 : vector<16x64xf32>
      %c0_19 = arith.constant 0 : index
      %41 = arith.index_cast %arg12 : i32 to index
      %c0_20 = arith.constant 0 : index
      %c0_21 = arith.constant 0 : index
      %42 = vector.load %arg5[%c0_19, %41, %c0_20, %c0_21] : memref<1x4x16x64xbf16, #tpu.memory_space<vmem>>, vector<1x1x16x64xbf16>
      %43 = vector.shape_cast %42 : vector<1x1x16x64xbf16> to vector<16x64xbf16>
      %44 = arith.truncf %24 : vector<64x64xf32> to vector<64x64xbf16>
      %cst_22 = arith.constant dense<0.000000e+00> : vector<16x64xf32>
      %45 = tpu.matmul %43, %44, %cst_22 {dimension_numbers = #tpu.dot_dimension_numbers<[1], [0], [0], [1], [0, 0, 1, 1], [], []>} : vector<16x64xbf16>, vector<64x64xbf16>, vector<16x64xf32> -> vector<16x64xf32>
      %46 = arith.addf %40, %45 : vector<16x64xf32>
      %47 = arith.index_cast %arg12 : i32 to index
      %c0_23 = arith.constant 0 : index
      %c0_24 = arith.constant 0 : index
      %48 = vector.load %arg11[%47, %c0_23, %c0_24] : memref<4x16x64xf32, #tpu.memory_space<vmem>>, vector<1x16x64xf32>
      %49 = vector.shape_cast %48 : vector<1x16x64xf32> to vector<16x64xf32>
      %50 = vector.shape_cast %46 : vector<16x64xf32> to vector<1x16x64xf32>
      tpu.vector_store %arg11[%47, %c0_23, %c0_24], %50 {strides = array<i32>} : memref<4x16x64xf32, #tpu.memory_space<vmem>>, vector<1x16x64xf32>,
      %51 = arith.index_cast %arg12 : i32 to index
      %c0_25 = arith.constant 0 : index
      %c0_26 = arith.constant 0 : index
      %52 = vector.load %arg9[%51, %c0_25, %c0_26] : memref<4x1x64xf32, #tpu.memory_space<vmem>>, vector<1x1x64xf32>
      %53 = vector.shape_cast %52 : vector<1x1x64xf32> to vector<1x64xf32>
      %54 = vector.shape_cast %19 : vector<1x64xf32> to vector<1x1x64xf32>
      tpu.vector_store %arg9[%51, %c0_25, %c0_26], %54 {strides = array<i32>} : memref<4x1x64xf32, #tpu.memory_space<vmem>>, vector<1x1x64xf32>,
    }
    %c4_i32_2 = arith.constant 4 : i32
    %c0_i32_3 = arith.constant 0 : i32
    %4 = arith.cmpi eq, %arg2, %c0_i32_3 : i32
    %5 = arith.extui %4 : i1 to i32
    %c0_i32_4 = arith.constant 0 : i32
    %6 = arith.cmpi ne, %5, %c0_i32_4 : i32
    scf.if %6 {
      %c0 = arith.constant 0 : index
      %c0_5 = arith.constant 0 : index
      %c0_6 = arith.constant 0 : index
      %7 = vector.load %arg10[%c0, %c0_5, %c0_6] : memref<4x1x64xf32, #tpu.memory_space<vmem>>, vector<4x1x64xf32>
      %8 = tpu.reciprocal %7 {approx = true} : vector<4x1x64xf32> -> vector<4x1x64xf32>
      %c0_7 = arith.constant 0 : index
      %c0_8 = arith.constant 0 : index
      %c0_9 = arith.constant 0 : index
      %9 = vector.load %arg11[%c0_7, %c0_8, %c0_9] : memref<4x16x64xf32, #tpu.memory_space<vmem>>, vector<4x16x64xf32>
      %10 = vector.broadcast %8 : vector<4x1x64xf32> to vector<4x16x64xf32>
      %11 = arith.mulf %9, %10 : vector<4x16x64xf32>
      %12 = arith.truncf %11 : vector<4x16x64xf32> to vector<4x16x64xbf16>
      %c0_10 = arith.constant 0 : index
      %c0_11 = arith.constant 0 : index
      %c0_12 = arith.constant 0 : index
      %c0_13 = arith.constant 0 : index
      %13 = vector.load %arg7[%c0_10, %c0_11, %c0_12, %c0_13] : memref<1x4x16x64xbf16, #tpu.memory_space<vmem>>, vector<1x4x16x64xbf16>
      %14 = vector.shape_cast %13 : vector<1x4x16x64xbf16> to vector<4x16x64xbf16>
      %15 = vector.shape_cast %12 : vector<4x16x64xbf16> to vector<1x4x16x64xbf16>
      tpu.vector_store %arg7[%c0_10, %c0_11, %c0_12, %c0_13], %15 {strides = array<i32>} : memref<1x4x16x64xbf16, #tpu.memory_space<vmem>>, vector<1x4x16x64xbf16>,
    } else {
    }
    return
  }
  func.func @transform_0(%arg0: i32, %arg1: i32, %arg2: i32) -> (i32, i32, i32, i32) {
    %c0_i32 = arith.constant 0 : i32
    %c0_i32_0 = arith.constant 0 : i32
    %c0_i32_1 = arith.constant 0 : i32
    return %arg1, %arg0, %c0_i32, %c0_i32_0 : i32, i32, i32, i32
  }
  func.func @transform_1(%arg0: i32, %arg1: i32, %arg2: i32) -> (i32, i32, i32, i32) {
    %c0_i32 = arith.constant 0 : i32
    %c0_i32_0 = arith.constant 0 : i32
    return %arg1, %arg0, %c0_i32, %arg2 : i32, i32, i32, i32
  }
  func.func @transform_2(%arg0: i32, %arg1: i32, %arg2: i32) -> (i32, i32, i32, i32) {
    %c0_i32 = arith.constant 0 : i32
    %c0_i32_0 = arith.constant 0 : i32
    return %arg1, %arg0, %c0_i32, %arg2 : i32, i32, i32, i32
  }
  func.func @transform_3(%arg0: i32, %arg1: i32, %arg2: i32) -> (i32, i32, i32, i32) {
    %c0_i32 = arith.constant 0 : i32
    %c0_i32_0 = arith.constant 0 : i32
    %c0_i32_1 = arith.constant 0 : i32
    %c0_i32_2 = arith.constant 0 : i32
    return %c0_i32, %arg0, %c0_i32_0, %c0_i32_1 : i32, i32, i32, i32
  }
  func.func @transform_4(%arg0: i32, %arg1: i32, %arg2: i32) -> (i32, i32, i32, i32) {
    %c0_i32 = arith.constant 0 : i32
    %c0_i32_0 = arith.constant 0 : i32
    %c0_i32_1 = arith.constant 0 : i32
    return %arg1, %arg0, %c0_i32, %c0_i32_0 : i32, i32, i32, i32
  }
}

</mosaic_0001>

<bundles_post_ra>
// kernel: mhsa_forward.2
= control target key start
LH: loop header
LB: loop body
LE: loop exit
PB: predicated region body
PF: predicated region fallthrough
CT: control target
= control target key end

     0   :  { %12 = vsyncpa [#allocation3], 0  ;;  %s1743_s0 = inlined_call_operand.vmem [shape: f32[2,64,64], index: 0, kind: input, shape index: {}]   ;;  %s1744_s1 = inlined_call_operand.vmem [shape: bf16[128,64], index: 1, kind: input, shape index: {}]   ;;  %s1745_s2 = inlined_call_operand.vmem [shape: f32[128,1], index: 2, kind: input, shape index: {}]   ;;  %s1746_s3 = inlined_call_operand.vmem [shape: bf16[64,64], index: 3, kind: input, shape index: {}]   ;;  %s1747_s4 = inlined_call_operand.vmem [shape: f32[64,1], index: 4, kind: input, shape index: {}]   ;;  %s1748_s5 = inlined_call_operand.hbm [shape: bf16[2,128,64], index: 5, kind: output, shape index: {0}]   ;;  %s1749_s6 = inlined_call_operand.hbm [shape: bf16[2,64,64], index: 6, kind: output, shape index: {1}]  }
   0x1   :  { %14 = vsyncpa [#allocation3 + $0x1], 0 }
   0x2   :  { %15 = vsyncpa [#allocation5], 0 }
   0x3   :  { %17 = vsyncpa [#allocation5 + $0x1], 0  ;;  %s1379_s21 = smov 0   ;;  %s1381_s22 = smov 0  }
   0x4   :  { %s1383_s23 = smov 0   ;;  %s1385_s24 = smov 0  }
   0x5   :  { %s1387_s25 = smov 0   ;;  %s1389_s26 = smov 0  }
   0x6 LB: > { %s998_s27 = sadd.s32 4294967295, %s1337_s26   ;;  %s999_s28 = sadd.s32 4294967294, %s1337_s26   ;;  %s1337_s26 = sphi %s1389_s26, %s23_s26   ;;  %s1333_s25 = sphi %s1387_s25, %s1756_s25   ;;  %s1329_s24 = sphi %s1385_s24, %s1755_s24   ;;  %s1325_s23 = sphi %s1383_s23, %s1754_s23   ;;  %s1321_s22 = sphi %s1381_s22, %s1753_s22   ;;  %s1317_s21 = sphi %s1379_s21, %s1752_s21  }
   0x7   : > { %s35_s29 = sadd.s32 1, %s1333_s25  ;;  %s156_s30 = sadd.s32 1, %s1325_s23 }
   0x8   : > { %p37_p0 = scmp.ge.s32.totalorder %s35_s29, 2  ;;  %p166_p1 = scmp.ne.s32.totalorder %s1325_s23, %s1321_s22 }
   0x9   : > { %p167_p2 = scmp.eq.s32.totalorder %s998_s27, 1  ;;  %p172_p3 = scmp.ne.s32.totalorder %s1321_s22, %s1317_s21 }
   0xa   : > { %s1758_s29 = smov (%p37_p0, %s35_s29), 0  ;;  %p173_p5 = scmp.eq.s32.totalorder %s999_s28, 1 }
   0xb   : > { %p1419_p4 = por %p167_p2, %p166_p1  ;;  %s151_s8 = ssub.s32 %s1333_s25, %s1758_s29 }
   0xc   : > { %p1002_p6 = scmp.ge.s32.totalorder %s1337_s26, 1  ;;  %p154_p7 = scmp.eq.s32.totalorder %s151_s8, 0 }
   0xd   : > { %p1426_p8 = por %p173_p5, %p172_p3  ;;  %p242_p9 = scmp.lt.s32.totalorder %s1337_s26, 3 }
   0xe   : > { %s1432_s10 = scalar_select %p154_p7, %s1325_s23, %s156_s30  }
   0xf   : > { %p243_p10 = pnand %p1002_p6, %p242_p9 }
  0x10   : > { %p280_p11 = scmp.lt.s32.totalorder (!%p243_p10), %s1329_s24, 1  ;;  %v1215_v0 = vld [vmem:[%s1744_s1] sm:$0xff] (!%p243_p10)   ;;  %vm453_vm0 = vcmask (!%p243_p10), 523264   ;;  %v1339_v2 = vmov (!%p243_p10), 0   ;;  %v319_v14 = vld [vmem:[%s1745_s2 + $0x10] sm:$0xff] (!%p243_p10)  ;;  %v320_v17 = vld [vmem:[%s1745_s2 + $0x18] sm:$0xff] (!%p243_p10) }
  0x11   : > { %246 = sbr.rel (%p243_p10) target bundleno = 314 (0x13a), region = 40  ;;  %v1216_v1 = vld [vmem:[%s1746_s3] sm:$0xff] (!%p243_p10)   ;;  %1118 = vmatprep.mubr.msk.bf16.mxu0 (!%p243_p10), %vm453_vm0, %v1215_v0  ;;  %1214 = vset.pattern.permute.xlu1 (!%p243_p10), %v1339_v2  ;;  %v318_v18 = vld [vmem:[%s1745_s2 + $0x8] sm:$0xff] (!%p243_p10)  ;;  %v1219_v23 = vld [vmem:[%s1744_s1 + $0x10] sm:$0xff] (!%p243_p10)   ;;  %s1582_s18 = sand.u32 (!%p243_p10), 1, %s1321_s22   ;;  %vm792_vm1 = vcmask (!%p243_p10), 519168  }
  0x12   : > { %1142 = vmatprep.mubr.msk.bf16.mxu1 (!%p243_p10), %vm453_vm0, %v1216_v1  ;;  %1213 = vset.pattern.permute.xlu0 (!%p243_p10), %v1339_v2  ;;  %v317_v15 = vld [vmem:[%s1745_s2] sm:$0xff] (!%p243_p10)  ;;  %v322_v19 = vld [vmem:[%s1745_s2 + $0x28] sm:$0xff] (!%p243_p10)  ;;  %v1220_v24 = vld [vmem:[%s1746_s3 + $0x10] sm:$0xff] (!%p243_p10)   ;;  %s1004_s20 = sshll.u32 (!%p243_p10), %s1582_s18, 5  ;;  %s1089_s30 = sshll.u32 (!%p243_p10), %s1329_s24, 9 }
  0x13   : > { %345 = vperm.xlu1 (!%p243_p10), %1214, %v319_v14   ;;  %335 = vperm.xlu0 (!%p243_p10), %1213, %v317_v15   ;;  %v1217_v20 = vld [vmem:[%s1744_s1 + $0x8] sm:$0xff] (!%p243_p10)   ;;  %v321_v22 = vld [vmem:[%s1745_s2 + $0x20] sm:$0xff] (!%p243_p10)  ;;  %v324_v25 = vld [vmem:[%s1745_s2 + $0x38] sm:$0xff] (!%p243_p10)  ;;  %s1590_s28 = scalar_lea.vmem (!%p243_p10), [#allocation4], %s1004_s20  ;;  %s1622_s13 = scalar_lea.hbm (!%p243_p10), %s1749_s6, %s1089_s30 }
  0x14   : > { %v1218_v21 = vld [vmem:[%s1746_s3 + $0x8] sm:$0xff] (!%p243_p10)   ;;  %v323_v26 = vld [vmem:[%s1745_s2 + $0x30] sm:$0xff] (!%p243_p10)  ;;  %v1221_v28 = vld [vmem:[%s1744_s1 + $0x18] sm:$0xff] (!%p243_p10)   ;;  %s886_s8 = sshll.u32 (!%p243_p10), %s1590_s28, 4  ;;  %s855_s14 = scalar_lea.sflag (!%p243_p10), [#allocation5], %s1582_s18  ;;  %s1624_s8 = int_to_ptr.vmem [resolvable:$true] %s886_s8 }
  0x15   : > { %v326_v27 = vld [vmem:[%s1745_s2 + $0x48] sm:$0xff] (!%p243_p10)  ;;  %v1222_v29 = vld [vmem:[%s1746_s3 + $0x18] sm:$0xff] (!%p243_p10)   ;;  %v325_v30 = vld [vmem:[%s1745_s2 + $0x40] sm:$0xff] (!%p243_p10) }
  0x16   : > { %v1223_v31 = vld [vmem:[%s1744_s1 + $0x20] sm:$0xff] (!%p243_p10)   ;;  %v328_v32 = vld [vmem:[%s1745_s2 + $0x58] sm:$0xff] (!%p243_p10)  ;;  %v327_v33 = vld [vmem:[%s1745_s2 + $0x50] sm:$0xff] (!%p243_p10) }
  0x17   : > { %350 = vperm.xlu1 (!%p243_p10), %1214, %v320_v17   ;;  %340 = vperm.xlu0 (!%p243_p10), %1213, %v318_v18   ;;  %v330_v34 = vld [vmem:[%s1745_s2 + $0x68] sm:$0xff] (!%p243_p10)  ;;  %v329_v36 = vld [vmem:[%s1745_s2 + $0x60] sm:$0xff] (!%p243_p10)  ;;  %v1225_v37 = vld [vmem:[%s1744_s1 + $0x30] sm:$0xff] (!%p243_p10)  }
  0x18   : > { %s281_s15 = scalar_select %p280_p11, %s1329_s24, 1  ;;  %v1224_v35 = vld [vmem:[%s1744_s1 + $0x28] sm:$0xff]   ;;  %v332_v38 = vld [vmem:[%s1745_s2 + $0x78] sm:$0xff]  ;;  %v331_v39 = vld [vmem:[%s1745_s2 + $0x70] sm:$0xff] }
  0x19   : > { %v584_v40 = vld [vmem:[%s1747_s4 + $0x8] sm:$0xff]  ;;  %v1226_v41 = vld [vmem:[%s1744_s1 + $0x38] sm:$0xff]   ;;  %v583_v42 = vld [vmem:[%s1747_s4] sm:$0xff] }
  0x1a   : > { %s1063_s16 = sshll.u32 %s281_s15, 6  ;;  %v586_v43 = vld [vmem:[%s1747_s4 + $0x18] sm:$0xff]  ;;  %v585_v44 = vld [vmem:[%s1747_s4 + $0x10] sm:$0xff]  ;;  %v588_v45 = vld [vmem:[%s1747_s4 + $0x28] sm:$0xff]  ;;  %s1227_s15 = scalar_lea.vmem %s1624_s8, 512 }
  0x1b   : > { %s287_s19 = scalar_lea.vmem %s1743_s0, %s1063_s16  ;;  %360 = vperm.xlu1 %1214, %v322_v19   ;;  %355 = vperm.xlu0 %1213, %v321_v22   ;;  %v587_v46 = vld [vmem:[%s1747_s4 + $0x20] sm:$0xff]  ;;  %v590_v47 = vld [vmem:[%s1747_s4 + $0x38] sm:$0xff]  ;;  %v589_v48 = vld [vmem:[%s1747_s4 + $0x30] sm:$0xff]  ;;  %p1228_p12 = scmp.ne.s32.totalorder %s1624_s8, %s1227_s15 }
  0x1c   : > { %v289_v3 = vld [vmem:[%s287_s19] sm:$0xff]  ;;  %v290_v4 = vld [vmem:[%s287_s19 + $0x8] sm:$0xff]  ;;  %v291_v5 = vld [vmem:[%s287_s19 + $0x10] sm:$0xff]  ;;  %s1340_s16 = smov [#allocation4]  }
  0x1d   : > { %v297_v6 = vpack.c.bf16 %v290_v4, %v289_v3  ;;  %v292_v7 = vld [vmem:[%s287_s19 + $0x18] sm:$0xff]  ;;  %v293_v9 = vld [vmem:[%s287_s19 + $0x20] sm:$0xff]  ;;  %v294_v10 = vld [vmem:[%s287_s19 + $0x28] sm:$0xff]  ;;  %p1229_p13 = pnand %p1228_p12, %p1419_p4  ;;  %s1231_s17 = sshll.u32 %s1340_s16, 4  ;;  %s1232_s17 = int_to_ptr.vmem [resolvable:$false] %s1231_s17 }
  0x1e   : > { %v298_v8 = vpack.c.bf16 %v292_v7, %v291_v5  ;;  %v299_v11 = vpack.c.bf16 %v294_v10, %v293_v9  ;;  %v295_v12 = vld [vmem:[%s287_s19 + $0x30] sm:$0xff]  ;;  %v296_v13 = vld [vmem:[%s287_s19 + $0x38] sm:$0xff]  ;;  %s1003_s19 = sshll.u32 %s1582_s18, 6  ;;  %p1234_p1 = scmp.lt.s32.totalorder %s1624_s8, %s1232_s17 }
  0x1f   : > { %1110 = vmatprep.subr.bf16.mxu0 %v297_v6  ;;  %1134 = vmatprep.subr.bf16.mxu1 %v297_v6  ;;  %v300_v16 = vpack.c.bf16 %v296_v13, %v295_v12  ;;  %s1586_s27 = scalar_lea.vmem [#allocation2], %s1003_s19  ;;  %p1230_p0 = pneg %p1229_p13 }
  0x20   : > { %1111 = vmatpush3.bf16.msra.mxu0 %v297_v6  ;;  %1135 = vmatpush3.bf16.msra.mxu1 %v297_v6  ;;  %s1233_s19 = scalar_lea.vmem %s1232_s17, 1024 }
  0x21   : > { %1112 = vmatprep.subr.bf16.mxu0 %v298_v8  ;;  %1136 = vmatprep.subr.bf16.mxu1 %v298_v8  ;;  %p1235_p2 = scmp.lt.s32.totalorder %s1233_s19, %s1227_s15 }
  0x22   : > { %370 = vperm.xlu1 %1214, %v324_v25   ;;  %365 = vperm.xlu0 %1213, %v323_v26  }
  0x23   : > { %p1236_p3 = por %p1235_p2, %p1234_p1 }
  0x24   : > { %1113 = vmatpush3.bf16.msra.mxu0 %v298_v8  ;;  %1137 = vmatpush3.bf16.msra.mxu1 %v298_v8 }
  0x25   : > { %1114 = vmatprep.subr.bf16.mxu0 %v299_v11  ;;  %1138 = vmatprep.subr.bf16.mxu1 %v299_v11  ;;  %p1237_p5 = pnand %p1236_p3, %p1230_p0 }
  0x26   : > { %380 = vperm.xlu1 %1214, %v326_v27   ;;  %375 = vperm.xlu0 %1213, %v325_v30  }
  0x28   : > { %1115 = vmatpush3.bf16.msra.mxu0 %v299_v11  ;;  %1139 = vmatpush3.bf16.msra.mxu1 %v299_v11 }
  0x29   : > { %1116 = vmatprep.subr.bf16.mxu0 %v300_v16  ;;  %1140 = vmatprep.subr.bf16.mxu1 %v300_v16 }
  0x2a   : > { %390 = vperm.xlu1 %1214, %v328_v32   ;;  %385 = vperm.xlu0 %1213, %v327_v33  }
  0x2c   : > { %1117 = vmatpush3.bf16.msra.mxu0 %v300_v16  ;;  %1141 = vmatpush3.bf16.msra.mxu1 %v300_v16 }
  0x2e   : > { %400 = vperm.xlu1 %1214, %v330_v34   ;;  %395 = vperm.xlu0 %1213, %v329_v36  }
  0x2f   : > { %1119 = vmatmul.mubr.msk.bf16.vlgmr.msra.gmra.mrb[0].mxu0 %vm453_vm0, %v1217_v20  ;;  %1143 = vmatmul.mubr.msk.bf16.vlgmr.msra.gmra.mrb[0].mxu1 %vm453_vm0, %v1218_v21 }
  0x30   : > { %1122 = vmatprep.mubr.msk.bf16.mxu0 %vm453_vm0, %v1219_v23  ;;  %1146 = vmatprep.mubr.msk.bf16.mxu1 %vm453_vm0, %v1220_v24 }
  0x32   : > { %410 = vperm.xlu1 %1214, %v332_v38   ;;  %405 = vperm.xlu0 %1213, %v331_v39  }
  0x36   : > { %598 = vperm.xlu1 %1214, %v584_v40   ;;  %593 = vperm.xlu0 %1213, %v583_v42  }
  0x37   : > { %1123 = vmatmul.mubr.msk.bf16.gmra.mrb[4].mxu0 %vm453_vm0, %v1221_v28  ;;  %1147 = vmatmul.mubr.msk.bf16.gmra.mrb[4].mxu1 %vm453_vm0, %v1222_v29 }
  0x38   : > { %1126 = vmatprep.mubr.msk.bf16.mxu0 %vm453_vm0, %v1223_v31 }
  0x3a   : > { %608 = vperm.xlu1 %1214, %v586_v43   ;;  %603 = vperm.xlu0 %1213, %v585_v44  }
  0x3e   : > { %618 = vperm.xlu1 %1214, %v588_v45   ;;  %613 = vperm.xlu0 %1213, %v587_v46  }
  0x3f   : > { %1127 = vmatmul.mubr.msk.bf16.gmra.mrb[8].mxu0 %vm453_vm0, %v1224_v35 }
  0x40   : > { %1130 = vmatprep.mubr.msk.bf16.mxu0 %vm453_vm0, %v1225_v37 }
  0x42   : > { %628 = vperm.xlu1 %1214, %v590_v47   ;;  %623 = vperm.xlu0 %1213, %v589_v48  }
  0x47   : > { %1131 = vmatmul.mubr.msk.bf16.gmra.mrb[12].mxu0 %vm453_vm0, %v1226_v41 }
  0x92   : > { %v346_v49 = vpop.permute.xlu1 %345  ;;  %v336_v50 = vpop.permute.xlu0 %335 }
  0x96   : > { %v351_v51 = vpop.permute.xlu1 %350  ;;  %v341_v52 = vpop.permute.xlu0 %340 }
  0x9a   : > { %v1559_v53 = vpop.permute.xlu1 %360  ;;  %v1561_v54 = vpop.permute.xlu0 %355 }
  0xa1   : > { %v1563_v55 = vpop.permute.xlu1 %370  ;;  %v366_v56 = vpop.permute.xlu0 %365 }
  0xa5   : > { %v1565_v57 = vpop.permute.xlu1 %380  ;;  %v1567_v58 = vpop.permute.xlu0 %375 }
  0xa9   : > { %v1569_v59 = vpop.permute.xlu1 %390  ;;  %v1571_v60 = vpop.permute.xlu0 %385 }
  0xad   : > { %v1573_v61 = vpop.permute.xlu1 %400  ;;  %v1575_v62 = vpop.permute.xlu0 %395 }
  0xb1   : > { %v1577_v63 = vpop.permute.xlu1 %410  ;;  %v1579_v0 = vpop.permute.xlu0 %405 }
  0xb5   : > { %v599_v1 = vpop.permute.xlu1 %598  ;;  %v594_v2 = vpop.permute.xlu0 %593 }
  0xb9   : > { %v609_v3 = vpop.permute.xlu1 %608  ;;  %v604_v4 = vpop.permute.xlu0 %603 }
  0xbd   : > { %v619_v5 = vpop.permute.xlu1 %618  ;;  %v614_v6 = vpop.permute.xlu0 %613 }
  0xc1   : > { %v629_v31 = vpop.permute.xlu1 %628  ;;  %v624_v32 = vpop.permute.xlu0 %623 }
 0x102   : > { %v1120_v7 = vpop.f32.mrb[0].mxu0  ;;  %v1144_v8 = vpop.f32.mrb[0].mxu1 }
 0x103   : > { %v521_v9 = vadd.f32 %v1120_v7, %v346_v49  ;;  %v706_v10 = vadd.f32 %v1144_v8, %v604_v4  ;;  %v512_v11 = vpop.f32.mrb[1].mxu0  ;;  %v697_v12 = vpop.f32.mrb[1].mxu1 }
 0x104   : > { %v513_v13 = vadd.f32 %v512_v11, %v336_v50  ;;  %v698_v14 = vadd.f32 %v697_v12, %v594_v2  ;;  %v1121_v15 = vpop.f32.mrb[2].mxu0  ;;  %v1145_v16 = vpop.f32.mrb[2].mxu1 }
 0x105   : > { %v1066_v17 = vpack.c.bf16 %v521_v9, %v521_v9  ;;  %v1082_v18 = vpack.c.bf16 %v706_v10, %v706_v10  ;;  %v524_v19 = vadd.f32 %v1121_v15, %v351_v51  ;;  %v709_v20 = vadd.f32 %v1145_v16, %v609_v3  ;;  %v515_v21 = vpop.f32.mrb[3].mxu0  ;;  %v700_v22 = vpop.f32.mrb[3].mxu1 }
 0x106   : > { %v1064_v23 = vpack.c.bf16 %v513_v13, %v513_v13  ;;  %v1080_v24 = vpack.c.bf16 %v698_v14, %v698_v14  ;;  %v516_v25 = vadd.f32 %v515_v21, %v341_v52  ;;  %v701_v26 = vadd.f32 %v700_v22, %v599_v1 }
 0x107   : > { %795 = vst.msk [vmem:[%s1586_s27 + $0x8] sm:$0xf] %vm792_vm1, %v1066_v17  ;;  %843 = vst.msk [vmem:[%s1590_s28 + $0x8] sm:$0xf] %vm792_vm1, %v1082_v18  ;;  %v1067_v27 = vpack.c.bf16 %v524_v19, %v524_v19  ;;  %v1083_v28 = vpack.c.bf16 %v709_v20, %v709_v20 }
 0x108   : > { %793 = vst.msk [vmem:[%s1586_s27] sm:$0xf] %vm792_vm1, %v1064_v23  ;;  %841 = vst.msk [vmem:[%s1590_s28] sm:$0xf] %vm792_vm1, %v1080_v24  ;;  %v1065_v29 = vpack.c.bf16 %v516_v25, %v516_v25  ;;  %v1081_v30 = vpack.c.bf16 %v701_v26, %v701_v26 }
 0x109   : > { %796 = vst.msk [vmem:[%s1586_s27 + $0xc] sm:$0xf] %vm792_vm1, %v1067_v27  ;;  %844 = vst.msk [vmem:[%s1590_s28 + $0xc] sm:$0xf] %vm792_vm1, %v1083_v28 }
 0x10a   : > { %794 = vst.msk [vmem:[%s1586_s27 + $0x4] sm:$0xf] %vm792_vm1, %v1065_v29  ;;  %842 = vst.msk [vmem:[%s1590_s28 + $0x4] sm:$0xf] %vm792_vm1, %v1081_v30  ;;  %v1124_v33 = vpop.f32.mrb[4].mxu0  ;;  %v1148_v34 = vpop.f32.mrb[4].mxu1 }
 0x10b   : > { %v537_v35 = vadd.f32 %v1124_v33, %v366_v56  ;;  %v722_v36 = vadd.f32 %v1148_v34, %v624_v32  ;;  %v528_v37 = vpop.f32.mrb[5].mxu0  ;;  %v713_v38 = vpop.f32.mrb[5].mxu1 }
 0x10c   : > { %v529_v39 = vadd.f32 %v528_v37, %v1561_v54  ;;  %v714_v40 = vadd.f32 %v713_v38, %v614_v6  ;;  %v1125_v41 = vpop.f32.mrb[6].mxu0  ;;  %v1149_v42 = vpop.f32.mrb[6].mxu1 }
 0x10d   : > { %v1070_v43 = vpack.c.bf16 %v537_v35, %v537_v35  ;;  %v1086_v44 = vpack.c.bf16 %v722_v36, %v722_v36  ;;  %v540_v45 = vadd.f32 %v1125_v41, %v1563_v55  ;;  %v725_v46 = vadd.f32 %v1149_v42, %v629_v31  ;;  %v531_v47 = vpop.f32.mrb[7].mxu0  ;;  %v716_v48 = vpop.f32.mrb[7].mxu1 }
 0x10e   : > { %v1068_v49 = vpack.c.bf16 %v529_v39, %v529_v39  ;;  %v1084_v50 = vpack.c.bf16 %v714_v40, %v714_v40  ;;  %v532_v51 = vadd.f32 %v531_v47, %v1559_v53  ;;  %v717_v52 = vadd.f32 %v716_v48, %v619_v5 }
 0x10f   : > { %799 = vst.msk [vmem:[%s1586_s27 + $0x18] sm:$0xf] %vm792_vm1, %v1070_v43  ;;  %847 = vst.msk [vmem:[%s1590_s28 + $0x18] sm:$0xf] %vm792_vm1, %v1086_v44  ;;  %v1071_v54 = vpack.c.bf16 %v540_v45, %v540_v45  ;;  %v1087_v55 = vpack.c.bf16 %v725_v46, %v725_v46 }
 0x110   : > { %797 = vst.msk [vmem:[%s1586_s27 + $0x10] sm:$0xf] %vm792_vm1, %v1068_v49  ;;  %845 = vst.msk [vmem:[%s1590_s28 + $0x10] sm:$0xf] %vm792_vm1, %v1084_v50  ;;  %v1069_v56 = vpack.c.bf16 %v532_v51, %v532_v51  ;;  %v1085_v1 = vpack.c.bf16 %v717_v52, %v717_v52 }
 0x111   : > { %800 = vst.msk [vmem:[%s1586_s27 + $0x1c] sm:$0xf] %vm792_vm1, %v1071_v54  ;;  %848 = vst.msk [vmem:[%s1590_s28 + $0x1c] sm:$0xf] %vm792_vm1, %v1087_v55 }
 0x112   : > { %798 = vst.msk [vmem:[%s1586_s27 + $0x14] sm:$0xf] %vm792_vm1, %v1069_v56  ;;  %846 = vst.msk [vmem:[%s1590_s28 + $0x14] sm:$0xf] %vm792_vm1, %v1085_v1  ;;  %v1128_v53 = vpop.f32.mrb[8].mxu0 }
 0x113   : > { %v553_v2 = vadd.f32 %v1128_v53, %v1571_v60  ;;  %v544_v3 = vpop.f32.mrb[9].mxu0 }
 0x114   : > { %1240 = shalt.err (!%p1237_p5)
}
 0x115   : > { %s1241_s20 = scalar_lea.hbm %s1622_s13, 512  ;;  %s1245_s11 = scalar_lea.hbm %s1749_s6, 1024 }
 0x116   : > { %p1242_p6 = scmp.ne.s32.totalorder %s1622_s13, %s1241_s20  ;;  %p1246_p10 = scmp.lt.u32.totalorder %s1622_s13, %s1749_s6 }
 0x117   : > { %p1247_p11 = scmp.lt.u32.totalorder %s1245_s11, %s1241_s20  ;;  %p1249_p13 = scmp.lt.u32.totalorder %s1241_s20, %s1622_s13 }
 0x118   : > { %p1243_p7 = pnand %p1242_p6, %p1419_p4 }
 0x119   : > { %p1248_p12 = por %p1247_p11, %p1246_p10 }
 0x11a   : > { %p1244_p9 = pneg %p1243_p7 }
 0x11b   : > { %p1250_p0 = por %p1249_p13, %p1248_p12 }
 0x11d   : > { %p1251_p1 = pnand %p1250_p0, %p1244_p9 }
 0x11f   : > { %1254 = shalt.err (!%p1251_p1)
}
 0x120   : > { %s1341_s15 = smov 64   ;;  %s1342_s17 = smov 4   ;;  %v545_v60 = vadd.f32 %v544_v3, %v1567_v58  ;;  %v1129_v4 = vpop.f32.mrb[10].mxu0  ;;  %v1074_v5 = vpack.c.bf16 %v553_v2, %v553_v2 }
 0x121   : > { %1151 = dma.vmem_to_hbm [thread:$0]  (%p1419_p4), %s1624_s8, 512, %s1622_s13, %s855_s14, %s1341_s15, %s1341_s15, %s1342_s17   ;;  %v556_v6 = vadd.f32 %v1129_v4, %v1569_v59  ;;  %v547_v7 = vpop.f32.mrb[11].mxu0 }
 0x122   : > { %v1072_v8 = vpack.c.bf16 %v545_v60, %v545_v60  ;;  %v548_v9 = vadd.f32 %v547_v7, %v1565_v57  ;;  %803 = vst.msk [vmem:[%s1586_s27 + $0x28] sm:$0xf] %vm792_vm1, %v1074_v5  ;;  %v1132_v58 = vpop.f32.mrb[12].mxu0  ;;  %s1088_s8 = sshll.u32 %s1329_s24, 10  ;;  %s869_s13 = sshll.u32 %s1586_s27, 4  ;;  %s1688_s13 = int_to_ptr.vmem [resolvable:$true] %s869_s13 }
 0x123   : > { %v1075_v10 = vpack.c.bf16 %v556_v6, %v556_v6  ;;  %v569_v59 = vadd.f32 %v1132_v58, %v1579_v0  ;;  %v560_v12 = vpop.f32.mrb[13].mxu0  ;;  %s1686_s20 = scalar_lea.hbm %s1748_s5, %s1088_s8  ;;  %s850_s24 = scalar_lea.sflag [#allocation3], %s1582_s18 }
 0x124   : > { %801 = vst.msk [vmem:[%s1586_s27 + $0x20] sm:$0xf] %vm792_vm1, %v1072_v8  ;;  %v1073_v11 = vpack.c.bf16 %v548_v9, %v548_v9  ;;  %v561_v57 = vadd.f32 %v560_v12, %v1575_v62  ;;  %v1133_v13 = vpop.f32.mrb[14].mxu0  ;;  %s1255_s28 = scalar_lea.vmem %s1688_s13, 1024  ;;  %s1343_s30 = smov [#allocation2]  }
 0x125   : > { %804 = vst.msk [vmem:[%s1586_s27 + $0x2c] sm:$0xf] %vm792_vm1, %v1075_v10  ;;  %v1078_v14 = vpack.c.bf16 %v569_v59, %v569_v59  ;;  %v572_v15 = vadd.f32 %v1133_v13, %v1577_v63  ;;  %v563_v16 = vpop.f32.mrb[15].mxu0  ;;  %p1256_p2 = scmp.ne.s32.totalorder %s1688_s13, %s1255_s28  ;;  %s1259_s11 = sshll.u32 %s1343_s30, 4  ;;  %s1260_s11 = int_to_ptr.vmem [resolvable:$false] %s1259_s11 }
 0x126   : > { %802 = vst.msk [vmem:[%s1586_s27 + $0x24] sm:$0xf] %vm792_vm1, %v1073_v11  ;;  %v1076_v17 = vpack.c.bf16 %v561_v57, %v561_v57  ;;  %v564_v18 = vadd.f32 %v563_v16, %v1573_v61  ;;  %s1261_s12 = scalar_lea.vmem %s1260_s11, 2048  ;;  %p1262_p6 = scmp.lt.s32.totalorder %s1688_s13, %s1260_s11 }
 0x127   : > { %807 = vst.msk [vmem:[%s1586_s27 + $0x38] sm:$0xf] %vm792_vm1, %v1078_v14  ;;  %v1079_v0 = vpack.c.bf16 %v572_v15, %v572_v15  ;;  %p1257_p3 = pnand %p1256_p2, %p1419_p4  ;;  %p1263_p7 = scmp.lt.s32.totalorder %s1261_s12, %s1255_s28 }
 0x128   : > { %805 = vst.msk [vmem:[%s1586_s27 + $0x30] sm:$0xf] %vm792_vm1, %v1076_v17  ;;  %v1077_v19 = vpack.c.bf16 %v564_v18, %v564_v18 }
 0x129   : > { %808 = vst.msk [vmem:[%s1586_s27 + $0x3c] sm:$0xf] %vm792_vm1, %v1079_v0  ;;  %p1258_p5 = pneg %p1257_p3  ;;  %p1264_p9 = por %p1263_p7, %p1262_p6 }
 0x12a   : > { %806 = vst.msk [vmem:[%s1586_s27 + $0x34] sm:$0xf] %vm792_vm1, %v1077_v19 }
 0x12b   : > { %p1265_p10 = pnand %p1264_p9, %p1258_p5 }
 0x12d   : > { %1268 = shalt.err (!%p1265_p10)
}
 0x12e   : > { %s1269_s27 = scalar_lea.hbm %s1686_s20, 1024  ;;  %s1273_s14 = scalar_lea.hbm %s1748_s5, 2048 }
 0x12f   : > { %p1270_p11 = scmp.ne.s32.totalorder %s1686_s20, %s1269_s27  ;;  %p1274_p0 = scmp.lt.u32.totalorder %s1686_s20, %s1748_s5 }
 0x130   : > { %p1275_p1 = scmp.lt.u32.totalorder %s1273_s14, %s1269_s27  ;;  %p1277_p3 = scmp.lt.u32.totalorder %s1269_s27, %s1686_s20 }
 0x131   : > { %p1271_p12 = pnand %p1270_p11, %p1419_p4 }
 0x132   : > { %p1276_p2 = por %p1275_p1, %p1274_p0 }
 0x133   : > { %p1272_p13 = pneg %p1271_p12 }
 0x134   : > { %p1278_p5 = por %p1277_p3, %p1276_p2 }
 0x136   : > { %p1279_p6 = pnand %p1278_p5, %p1272_p13 }
 0x138   : > { %1282 = shalt.err (!%p1279_p6)
}
 0x139   : > { %1150 = dma.vmem_to_hbm [thread:$0]  (%p1419_p4), %s1688_s13, 1024, %s1686_s20, %s850_s24, %s1341_s15, %s1341_s15, %s1342_s17  }
 0x13a PF: > { %p1161_p7 = scmp.ge.s32.totalorder %s1337_s26, 2  ;;  %s901_s28 = sand.u32 1, %s1317_s21  }
 0x13b   : > { %s902_s11 = scalar_lea.sflag [#allocation3], %s901_s28 }
 0x13c   : > { %p1155_p9 = pnand %p1161_p7, %p1426_p8 }
 0x13e   : > { %1308 = dma.done.wait (!%p1155_p9), %s902_s11, 1024  }
 0x13f   : > { %1310 = vsyncadd (!%p1155_p9), %s902_s11, 4294966272  ;;  %s911_s7 = scalar_lea.sflag [#allocation5], %s901_s28 }
 0x140   : > { %1312 = dma.done.wait (!%p1155_p9), %s911_s7, 512  }
 0x141   : > { %1314 = vsyncadd (!%p1155_p9), %s911_s7, 4294966784  ;;  %s23_s26 = sadd.s32 1, %s1337_s26   ;;  %s1752_s21 = smov %s1321_s22 }
 0x142   : > { %p20_p10 = scmp.ge.s32.totalorder %s23_s26, 4   ;;  %s1753_s22 = smov %s1325_s23 }
 0x143   : > { %s1754_s23 = smov %s1432_s10  ;;  %s1755_s24 = smov %s1333_s25 }
 0x144   : > { %s1756_s25 = smov %s1758_s29  ;;  %22 = sbr.rel (!%p20_p10) target bundleno = 6 (0x6), region = 92 }
 0x14b   :  { %916 = vsyncpa [#allocation3], 1 }
 0x14c   :  { %918 = vsyncpa [#allocation3 + $0x1], 1 }
 0x14d   :  { %919 = vsyncpa [#allocation5], 1 }
 0x14e   :  { %921 = vsyncpa [#allocation5 + $0x1], 1 }

// kernel: mhsa_forward.3
= control target key start
LH: loop header
LB: loop body
LE: loop exit
PB: predicated region body
PF: predicated region fallthrough
CT: control target
= control target key end

     0   :  { %s1909_s0 = inlined_call_operand.hbm [shape: bf16[2,4,32,64], index: 0, kind: input, shape index: {}, may-alias: {0,1}]   ;;  %s1910_s1 = inlined_call_operand.hbm [shape: bf16[2,4,32,64], index: 1, kind: input, shape index: {}, may-alias: {0,1}]   ;;  %s1911_s2 = inlined_call_operand.hbm [shape: bf16[2,4,16,64], index: 2, kind: input, shape index: {}]   ;;  %s1912_s3 = inlined_call_operand.hbm [shape: bf16[1,4,16,64], index: 3, kind: input, shape index: {}]   ;;  %s1913_s4 = inlined_call_operand.hbm [shape: bf16[2,4,16,64], index: 4, kind: output, shape index: {}]  }
   0x1   :  { %1921 = sst [smem:[#allocation24_spill]] %s1909_s0 }
   0x2   :  { %1922 = sst [smem:[#allocation25_spill]] %s1912_s3 }
   0x3   :  { %9 = vsyncpa [#allocation7], 0 }
   0x4   :  { %11 = vsyncpa [#allocation7 + $0x1], 0 }
   0x5   :  { %12 = vsyncpa [#allocation10], 0 }
   0x6   :  { %14 = vsyncpa [#allocation10 + $0x1], 0 }
   0x7   :  { %15 = vsyncpa [#allocation13], 0 }
   0x8   :  { %16 = vsyncpa [#allocation8], 0 }
   0x9   :  { %18 = vsyncpa [#allocation8 + $0x1], 0  ;;  %s1521_s15 = smov 0   ;;  %s1523_s16 = smov 0  }
   0xa   :  { %s1525_s17 = smov 0   ;;  %s1527_s18 = smov 0  }
   0xb   :  { %s1529_s19 = smov 0   ;;  %s1531_s20 = smov 0  }
   0xc LB: > { %s1552_s21 = sadd.s32 4294967295, %s1470_s20   ;;  %s1045_s22 = sadd.s32 4294967294, %s1470_s20   ;;  %s1470_s20 = sphi %s1531_s20, %s24_s20   ;;  %s1466_s19 = sphi %s1529_s19, %s1947_s19   ;;  %s1462_s18 = sphi %s1527_s18, %s1946_s18   ;;  %s1458_s17 = sphi %s1525_s17, %s1945_s17   ;;  %s1454_s16 = sphi %s1523_s16, %s1944_s16   ;;  %s1450_s15 = sphi %s1521_s15, %s1943_s15  }
   0xd   : > { %s39_s23 = sadd.s32 1, %s1466_s19  ;;  %s52_s24 = sadd.s32 1, %s1458_s17 }
   0xe   : > { %p41_p0 = scmp.ge.s32.totalorder %s39_s23, 2  ;;  %p59_p1 = scmp.ne.s32.totalorder %s1458_s17, %s1454_s16 }
   0xf   : > { %p60_p2 = scmp.eq.s32.totalorder %s1470_s20, 0  ;;  %p65_p3 = scmp.ne.s32.totalorder %s1454_s16, %s1450_s15 }
  0x10   : > { %s1949_s23 = smov (%p41_p0, %s39_s23), 0  ;;  %p1914_p5 = scmp.eq.s32.totalorder %s1552_s21, 0 }
  0x11   : > { %1923 = sst [smem:[#allocation22_spill]] %s1949_s23  ;;  %p1564_p4 = por %p60_p2, %p59_p1 }
  0x12   : > { %s47_s26 = ssub.s32 %s1466_s19, %s1949_s23  ;;  %p177_p6 = scmp.eq.s32.totalorder %s1552_s21, 1 }
  0x13   : > { %s1924_s25 = scalar_select %p1564_p4, 1, 0 }
  0x14   : > { %p50_p7 = scmp.eq.s32.totalorder %s47_s26, 0  ;;  %p1574_p8 = por %p1914_p5, %p65_p3 }
  0x15   : > { %p1578_p9 = por %p177_p6, %p59_p1  ;;  %p183_p10 = scmp.eq.s32.totalorder %s1045_s22, 1 }
  0x16   : > { %s1925_s27 = scalar_select %p1574_p8, 1, 0 }
  0x17   : > { %s1926_s28 = scalar_select %p1578_p9, 1, 0 }
  0x18   : > { %s1583_s29 = scalar_select %p50_p7, %s1458_s17, %s52_s24  }
  0x19   : > { %p1585_p11 = por %p183_p10, %p65_p3  ;;  %p1046_p12 = scmp.ge.s32.totalorder %s1470_s20, 1 }
  0x1a   : > { %1927 = sst [smem:[#allocation23_spill]] %s1583_s29  ;;  %p190_p13 = scmp.lt.s32.totalorder %s1470_s20, 3 }
  0x1b   : > { %s1928_s30 = scalar_select %p1585_p11, 1, 0 }
  0x1c   : > { %p1591_p0 = pnand %p1046_p12, %p190_p13  ;;  %s1476_s6 = smov [#allocation12]  }
  0x1d   : > { %s206_s7 = sshll.u32 %s1476_s6, 4  ;;  %s1931_s3 = sld [smem:[#allocation25_spill]]  ;;  %s207_s7 = int_to_ptr.vmem [resolvable:$true] %s206_s7 }
  0x1e   : > { %s1929_s5 = scalar_select %p1591_p0, 1, 0 }
  0x1f   : > { %p1170_p1 = pneg %p1591_p0 }
  0x21   : > { %p1599_p2 = pnand %p1170_p1, %p1914_p5 }
  0x23   : > { %s1292_s11 = scalar_lea.hbm %s1931_s3, 512  ;;  %p1294_p6 = pneg %p1599_p2 }
  0x24   : > { %p1293_p3 = scmp.ne.s32.totalorder %s1931_s3, %s1292_s11  ;;  %p1299_p12 = scmp.lt.u32.totalorder %s1292_s11, %s1931_s3 }
  0x26   : > { %p1295_p7 = pnand %p1294_p6, %p1293_p3 }
  0x28   : > { %p1296_p10 = pneg %p1295_p7 }
  0x2a   : > { %p1301_p13 = pnand %p1299_p12, %p1296_p10 }
  0x2c   : > { %1304 = shalt.err (!%p1301_p13)
}
  0x2d   : > { %s1305_s24 = scalar_lea.vmem %s207_s7, 512  ;;  %p1313_p9 = scmp.lt.s32.totalorder %s207_s7, %s207_s7 }
  0x2e   : > { %p1306_p1 = scmp.ne.s32.totalorder %s207_s7, %s1305_s24  ;;  %p1314_p8 = scmp.lt.s32.totalorder %s1305_s24, %s1305_s24 }
  0x30   : > { %p1308_p5 = pnand %p1306_p1, %p1294_p6  ;;  %p1315_p0 = por %p1314_p8, %p1313_p9 }
  0x32   : > { %p1309_p11 = pneg %p1308_p5 }
  0x34   : > { %p1316_p4 = pnand %p1315_p0, %p1309_p11 }
  0x36   : > { %1319 = shalt.err (!%p1316_p4)
}
  0x37   : > { %s1477_s26 = smov 64   ;;  %s1478_s6 = smov 4  }
  0x38   : > { %1173 = dma.hbm_to_vmem [thread:$0]  (!%p1599_p2), %s1931_s3, 512, %s207_s7, [#allocation13], %s1477_s26, %s1477_s26, %s1478_s6  }
  0x39   : > { %p1048_p3 = scmp.ge.s32.totalorder %s1470_s20, 2 }
  0x3b   : > { %216 = sbr.rel (%p1048_p3) target bundleno = 130 (0x82), region = 20 }
  0x42   : > { %s1623_s11 = sand.u32 1, %s1458_s17   ;;  %s1101_s8 = sshll.u32 %s1466_s19, 10 }
  0x43   : > { %s1919_s12 = sshll.u32 %s1623_s11, 5  ;;  %s1932_s0 = sld [smem:[#allocation24_spill]] }
  0x44   : > { %p1933_p4 = scmp.ne.s32.totalorder %s1924_s25, 0  ;;  %s224_s24 = scalar_lea.vmem [#allocation6], %s1919_s12 }
  0x45   : > { %s246_s26 = sshll.u32 %s224_s24, 4  ;;  %s1479_s9 = smov 256   ;;  %s247_s26 = int_to_ptr.vmem [resolvable:$true] %s246_s26 }
  0x46   : > { %s1153_s22 = scalar_select %p1933_p4, [#allocation0], [#allocation17] }
  0x47   : > { %1154 = sst [smem:[#allocation16]] (%p1933_p4), %s1479_s9  ;;  %s1480_s10 = smov 128  }
  0x48   : > { %s238_s6 = sld [smem:[%s1153_s22]]   ;;  %s1481_s3 = smov 2  }
  0x49   : > { %s233_s14 = scalar_lea.hbm %s1932_s0, %s1101_s8  ;;  %1155 = sst [smem:[#allocation16 + $0x1]] (%p1933_p4), %s1480_s10 }
  0x4a   : > { %1156 = sst [smem:[#allocation16 + $0x2]] (%p1933_p4), %s1481_s3  ;;  %s1482_s7 = smov 64  }
  0x4b   : > { %1157 = sst [smem:[#allocation16 + $0x3]] (%p1933_p4), %s1482_s7  ;;  %s1483_s24 = smov 4  }
  0x4c   : > { %1158 = sst [smem:[#allocation16 + $0x4]] (%p1933_p4), %s1482_s7  ;;  %s221_s12 = scalar_lea.sflag [#allocation7], %s1623_s11 }
  0x4d   : > { %1159 = sst [smem:[#allocation16 + $0x5]] (%p1933_p4), %s1483_s24  ;;  %s1484_s0 = smov [#allocation15]  }
  0x4e   : > { %s1052_s13 = sshll.u32 %s238_s6, 26  ;;  %s269_s9 = sand.u32 1, %s1470_s20  }
  0x4f   : > { %s1053_s22 = sadd.s32 134217728, %s1052_s13  ;;  %s1054_s10 = sshll.u32 %s1623_s11, 6 }
  0x50   : > { %1160 = dma.general (%p1933_p4), %s233_s14, 512, %s247_s26, %s221_s12, %s1484_s0, [#allocation16], %s1053_s22, 0  }
  0x51   : > { %s1654_s29 = scalar_lea.hbm %s1910_s1, %s1101_s8  ;;  %s273_s6 = scalar_lea.vmem [#allocation9], %s1054_s10 }
  0x52   : > { %s284_s7 = sshll.u32 %s273_s6, 4  ;;  %s1658_s13 = scalar_lea.sflag [#allocation10], %s269_s9  ;;  %s1656_s7 = int_to_ptr.vmem [resolvable:$true] %s284_s7 }
  0x53   : > { %s1320_s0 = scalar_lea.hbm %s1654_s29, 1024  ;;  %s1324_s23 = scalar_lea.hbm %s1910_s1, 2048 }
  0x54   : > { %p1321_p5 = scmp.ne.s32.totalorder %s1654_s29, %s1320_s0  ;;  %p1325_p11 = scmp.lt.u32.totalorder %s1654_s29, %s1910_s1 }
  0x55   : > { %p1326_p0 = scmp.lt.u32.totalorder %s1324_s23, %s1320_s0  ;;  %p1328_p6 = scmp.lt.u32.totalorder %s1320_s0, %s1654_s29 }
  0x56   : > { %p1322_p8 = pnand %p1321_p5, %p1933_p4 }
  0x57   : > { %p1327_p2 = por %p1326_p0, %p1325_p11 }
  0x58   : > { %p1323_p9 = pneg %p1322_p8 }
  0x59   : > { %p1329_p7 = por %p1328_p6, %p1327_p2 }
  0x5b   : > { %p1330_p10 = pnand %p1329_p7, %p1323_p9 }
  0x5d   : > { %1333 = shalt.err (!%p1330_p10)
}
  0x5e   : > { %s1334_s24 = scalar_lea.vmem %s1656_s7, 1024  ;;  %s1485_s22 = smov [#allocation9]  }
  0x5f   : > { %p1335_p12 = scmp.ne.s32.totalorder %s1656_s7, %s1334_s24  ;;  %s1338_s9 = sshll.u32 %s1485_s22, 4  ;;  %s1339_s9 = int_to_ptr.vmem [resolvable:$false] %s1338_s9 }
  0x60   : > { %s1340_s10 = scalar_lea.vmem %s1339_s9, 2048  ;;  %p1341_p5 = scmp.lt.s32.totalorder %s1656_s7, %s1339_s9 }
  0x61   : > { %p1336_p13 = pnand %p1335_p12, %p1933_p4  ;;  %p1342_p8 = scmp.lt.s32.totalorder %s1340_s10, %s1334_s24 }
  0x63   : > { %p1337_p1 = pneg %p1336_p13  ;;  %p1343_p11 = por %p1342_p8, %p1341_p5 }
  0x65   : > { %p1344_p0 = pnand %p1343_p11, %p1337_p1 }
  0x67   : > { %1347 = shalt.err (!%p1344_p0)
}
  0x68   : > { %s1486_s3 = smov 64   ;;  %s1487_s6 = smov 4  }
  0x69   : > { %1161 = dma.hbm_to_vmem [thread:$0]  (%p1933_p4), %s1654_s29, 1024, %s1656_s7, %s1658_s13, %s1486_s3, %s1486_s3, %s1487_s6  }
  0x6a   : > { %s1103_s0 = sshll.u32 %s1466_s19, 9  ;;  %s1934_s12 = sshll.u32 %s1623_s11, 5 }
  0x6b   : > { %s298_s14 = scalar_lea.vmem [#allocation11], %s1934_s12  ;;  %s1691_s24 = scalar_lea.hbm %s1911_s2, %s1103_s0 }
  0x6c   : > { %s309_s23 = sshll.u32 %s298_s14, 4  ;;  %s1348_s22 = scalar_lea.hbm %s1691_s24, 512  ;;  %s1693_s23 = int_to_ptr.vmem [resolvable:$true] %s309_s23 }
  0x6d   : > { %p1349_p9 = scmp.ne.s32.totalorder %s1691_s24, %s1348_s22  ;;  %s1352_s7 = scalar_lea.hbm %s1911_s2, 1024 }
  0x6e   : > { %p1353_p7 = scmp.lt.u32.totalorder %s1691_s24, %s1911_s2  ;;  %p1354_p10 = scmp.lt.u32.totalorder %s1352_s7, %s1348_s22 }
  0x6f   : > { %p1350_p2 = pnand %p1349_p9, %p1933_p4  ;;  %p1356_p13 = scmp.lt.u32.totalorder %s1348_s22, %s1691_s24 }
  0x70   : > { %p1355_p12 = por %p1354_p10, %p1353_p7 }
  0x71   : > { %p1351_p6 = pneg %p1350_p2 }
  0x72   : > { %p1357_p1 = por %p1356_p13, %p1355_p12 }
  0x74   : > { %p1358_p5 = pnand %p1357_p1, %p1351_p6 }
  0x76   : > { %1361 = shalt.err (!%p1358_p5)
}
  0x77   : > { %s1362_s0 = scalar_lea.vmem %s1693_s23, 512  ;;  %s1488_s12 = smov [#allocation11]  }
  0x78   : > { %p1363_p8 = scmp.ne.s32.totalorder %s1693_s23, %s1362_s0  ;;  %s1366_s14 = sshll.u32 %s1488_s12, 4  ;;  %s1367_s14 = int_to_ptr.vmem [resolvable:$false] %s1366_s14 }
  0x79   : > { %s1368_s8 = scalar_lea.vmem %s1367_s14, 1024  ;;  %p1369_p9 = scmp.lt.s32.totalorder %s1693_s23, %s1367_s14 }
  0x7a   : > { %p1364_p11 = pnand %p1363_p8, %p1933_p4  ;;  %p1370_p2 = scmp.lt.s32.totalorder %s1368_s8, %s1362_s0 }
  0x7c   : > { %p1365_p0 = pneg %p1364_p11  ;;  %p1371_p7 = por %p1370_p2, %p1369_p9 }
  0x7e   : > { %p1372_p10 = pnand %p1371_p7, %p1365_p0 }
  0x80   : > { %1375 = shalt.err (!%p1372_p10)
}
  0x81   : > { %1162 = dma.hbm_to_vmem [thread:$0]  (%p1933_p4), %s1691_s24, 512, %s1693_s23, %s1658_s13, %s1486_s3, %s1486_s3, %s1487_s6  }
  0x82 PF: > { %p1935_p6 = scmp.ne.s32.totalorder %s1929_s5, 0 }
  0x83   : > { %s1723_s26 = sand.u32 (!%p1935_p6), 1, %s1454_s16   ;;  %p1936_p12 = scmp.ne.s32.totalorder (!%p1935_p6), %s1925_s27, 0 }
  0x84   : > { %321 = sbr.rel (%p1935_p6) target bundleno = 796 (0x31c), region = 36  ;;  %s1726_s22 = sshll.u32 (!%p1935_p6), %s1723_s26, 5 }
  0x85   : > { %s324_s25 = scalar_lea.sflag (!%p1935_p6), [#allocation7], %s1723_s26  ;;  %s1730_s29 = scalar_lea.vmem (!%p1935_p6), [#allocation6], %s1726_s22 }
  0x8b   : > { %1433 = dma.done.wait (%p1936_p12), %s324_s25, 512  }
  0x8c   : > { %1435 = vsyncadd (%p1936_p12), %s324_s25, 4294966784  ;;  %s332_s5 = sand.u32 1, %s1552_s21   ;;  %s1062_s13 = sshll.u32 %s1723_s26, 6 }
  0x8d   : > { %s333_s3 = scalar_lea.sflag [#allocation10], %s332_s5  ;;  %s1738_s6 = scalar_lea.vmem [#allocation9], %s1062_s13 }
  0x8e   : > { %1437 = dma.done.wait (%p1936_p12), %s333_s3, 1536  }
  0x8f   : > { %1439 = vsyncadd (%p1936_p12), %s333_s3, 4294965760  ;;  %s345_s23 = scalar_lea.vmem [#allocation11], %s1726_s22  ;;  %p1937_p4 = scmp.eq.s32.totalorder %s1552_s21, 0 }
  0x91   : > { %1441 = dma.done.wait (%p1937_p4), [#allocation13], 512   ;;  %p1938_p13 = pmov %p1937_p4 }
  0x92   : > { %vm394_vm0 = vcmask 516096   ;;  %v1489_v0 = vmov -inf   ;;  %v1490_v1 = vmov 0.0   ;;  %vm403_vm1 = vcmask 523264   ;;  %v1255_v2 = vld [vmem:[#allocation12] sm:$0xff]   ;;  %v1256_v3 = vld [vmem:[#allocation12 + $0x8] sm:$0xff]  }
  0x93   : > { %1443 = vsyncadd (%p1938_p13), [#allocation13], 4294966784  ;;  %395 = vst.msk [vmem:[#allocation3] sm:$0x1] %vm394_vm0, %v1489_v0  ;;  %v1257_v4 = vld [vmem:[#allocation12 + $0x10] sm:$0xff]   ;;  %v1258_v5 = vld [vmem:[#allocation12 + $0x18] sm:$0xff]  }
  0x94   : > { %396 = vst.msk [vmem:[#allocation3 + $0x1] sm:$0x1] %vm394_vm0, %v1489_v0  ;;  %397 = vst.msk [vmem:[#allocation3 + $0x2] sm:$0x1] %vm394_vm0, %v1489_v0  ;;  %v1259_v6 = vld [vmem:[%s1730_s29] sm:$0xff]   ;;  %v1260_v7 = vld [vmem:[%s1730_s29 + $0x8] sm:$0xff]  }
  0x95   : > { %398 = vst.msk [vmem:[#allocation3 + $0x3] sm:$0x1] %vm394_vm0, %v1489_v0  ;;  %399 = vst.msk [vmem:[#allocation4] sm:$0x1] %vm394_vm0, %v1490_v1  ;;  %v1261_v8 = vld [vmem:[%s1730_s29 + $0x10] sm:$0xff]   ;;  %v1262_v9 = vld [vmem:[%s1730_s29 + $0x18] sm:$0xff]  }
  0x96   : > { %400 = vst.msk [vmem:[#allocation4 + $0x1] sm:$0x1] %vm394_vm0, %v1490_v1  ;;  %401 = vst.msk [vmem:[#allocation4 + $0x2] sm:$0x1] %vm394_vm0, %v1490_v1  ;;  %s1778_s21 = scalar_lea.vmem [#allocation14], %s1726_s22  ;;  %s1780_s27 = smov 0  }
  0x97   : > { %402 = vst.msk [vmem:[#allocation4 + $0x3] sm:$0x1] %vm394_vm0, %v1490_v1 }
  0x98   : > { %404 = vst.msk [vmem:[#allocation5] sm:$0xff] %vm403_vm1, %v1490_v1  ;;  %405 = vst.msk [vmem:[#allocation5 + $0x8] sm:$0xff] %vm403_vm1, %v1490_v1 }
  0x99   : > { %406 = vst.msk [vmem:[#allocation5 + $0x10] sm:$0xff] %vm403_vm1, %v1490_v1  ;;  %407 = vst.msk [vmem:[#allocation5 + $0x18] sm:$0xff] %vm403_vm1, %v1490_v1 }
  0x9a   : > { %408 = vst.msk [vmem:[#allocation5 + $0x20] sm:$0xff] %vm403_vm1, %v1490_v1  ;;  %409 = vst.msk [vmem:[#allocation5 + $0x28] sm:$0xff] %vm403_vm1, %v1490_v1 }
  0x9b   : > { %410 = vst.msk [vmem:[#allocation5 + $0x30] sm:$0xff] %vm403_vm1, %v1490_v1  ;;  %411 = vst.msk [vmem:[#allocation5 + $0x38] sm:$0xff] %vm403_vm1, %v1490_v1 }
  0x9c   : > { %444 = vst.msk [vmem:[#allocation2] sm:$0xff] %vm403_vm1, %v1255_v2  ;;  %445 = vst.msk [vmem:[#allocation2 + $0x10] sm:$0xff] %vm403_vm1, %v1256_v3 }
  0x9d   : > { %446 = vst.msk [vmem:[#allocation2 + $0x20] sm:$0xff] %vm403_vm1, %v1257_v4  ;;  %447 = vst.msk [vmem:[#allocation2 + $0x30] sm:$0xff] %vm403_vm1, %v1258_v5 }
  0x9e   : > { %480 = vst.msk [vmem:[#allocation2 + $0x8] sm:$0xff] %vm403_vm1, %v1259_v6  ;;  %481 = vst.msk [vmem:[#allocation2 + $0x18] sm:$0xff] %vm403_vm1, %v1260_v7 }
  0x9f   : > { %482 = vst.msk [vmem:[#allocation2 + $0x28] sm:$0xff] %vm403_vm1, %v1261_v8  ;;  %483 = vst.msk [vmem:[#allocation2 + $0x38] sm:$0xff] %vm403_vm1, %v1262_v9 }
  0xa0 LB: >> { %s1786_s24 = sshll.u32 %s1474_s27, 4  ;;  %vm530_vm2 = vcmask 261120   ;;  %v1491_v18 = vmov 0.0   ;;  %s1106_s9 = sshll.u32 %s1474_s27, 3  ;;  %vm1492_vm3 = vmmov 0   ;;  %v637_v44 = vlaneseq  ;;  %s1474_s27 = sphi %s1780_s27, %s489_s27  }
  0xa1   : >> { %s492_s11 = scalar_lea.vmem %s1738_s6, %s1786_s24 [#allocation9]  ;;  %s499_s7 = scalar_lea.vmem [#allocation2], %s1786_s24  ;;  %1139 = vmatprep.subr.bf16.mxu1 %v1491_v18  ;;  %1147 = vmatprep.mubr.msk.bf16.mxu1 %vm1492_vm3, %v1491_v18 }
  0xa2   : >> { %v1263_v10 = vld [vmem:[%s492_s11] sm:$0xff]   ;;  %v1264_v11 = vld [vmem:[%s492_s11 + $0x8] sm:$0xff]   ;;  %s1795_s10 = scalar_lea.vmem %s345_s23, %s1106_s9 [#allocation11]  ;;  %v638_v47 = vshrl.u32 %v637_v44, 7  ;;  %s608_s0 = scalar_lea.vmem [#allocation3], %s1474_s27 }
  0xa3   : >> { %514 = vxpose.xlu0.c.b16.start [1/2] (short) (narrow) %v1263_v10, 64  ;;  %v609_v49 = vld [vmem:[%s608_s0] sm:$0x1]  ;;  %s666_s12 = scalar_lea.vmem [#allocation4], %s1474_s27  ;;  %s694_s14 = scalar_lea.vmem [#allocation5], %s1786_s24 }
  0xa4   : >> { %v1807_v51 = vsub.s32 0, %v638_v47  ;;  %s489_s27 = sadd.s32 1, %s1474_s27  }
  0xa5   : >> { %p486_p1 = scmp.ge.s32.totalorder %s489_s27, 4  }
  0xa6   : >> { %v500_v12 = vld [vmem:[%s499_s7] sm:$0xff]  ;;  %v501_v13 = vld [vmem:[%s499_s7 + $0x8] sm:$0xff]  ;;  %vm850_vm4 = vcmask (%p486_p1), 519168   ;;  %s1115_s8 = sshll.u32 (%p486_p1), %s1462_s18, 9  ;;  %s876_s22 = sshll.u32 (%p486_p1), %s1778_s21, 4  ;;  %s1848_s22 = int_to_ptr.vmem [resolvable:$true] %s876_s22 }
  0xa7   : >> { %1127 = vmatprep.subr.bf16.mxu0 %v500_v12  ;;  %515 = vxpose.xlu0.c.b16.end [2/2] (short) (narrow) %v1264_v11, 64  ;;  %s1846_s29 = scalar_lea.hbm (%p486_p1), %s1913_s4, %s1115_s8  ;;  %s860_s5 = scalar_lea.sflag (%p486_p1), [#allocation8], %s1723_s26 }
  0xa8   : >> { %1128 = vmatpush3.bf16.msra.mxu0 %v500_v12  ;;  %s1376_s13 = scalar_lea.vmem (%p486_p1), %s1848_s22, 512  ;;  %p1939_p8 = scmp.ne.s32.totalorder (%p486_p1), %s1926_s28, 0 }
  0xa9   : >> { %1129 = vmatprep.subr.bf16.mxu0 %v501_v13  ;;  %p1377_p5 = scmp.ne.s32.totalorder (%p486_p1), %s1848_s22, %s1376_s13  ;;  %s1493_s3 = smov (%p486_p1), [#allocation14]  }
  0xaa   : > { %s1380_s6 = sshll.u32 (%p486_p1), %s1493_s3, 4  ;;  %s1381_s6 = int_to_ptr.vmem [resolvable:$false] %s1380_s6 }
  0xab   : > { %p1378_p11 = pnand (%p486_p1), %p1377_p5, %p1939_p8  ;;  %s1382_s23 = scalar_lea.vmem (%p486_p1), %s1381_s6, 1024 }
  0xac   : >> { %1130 = vmatpush3.bf16.msra.mxu0 %v501_v13  ;;  %p1383_p9 = scmp.lt.s32.totalorder (%p486_p1), %s1848_s22, %s1381_s6  ;;  %p1384_p2 = scmp.lt.s32.totalorder (%p486_p1), %s1382_s23, %s1376_s13 }
  0xad   : > { %p1379_p0 = pneg (%p486_p1), %p1378_p11 }
  0xae   : > { %p1385_p7 = por (%p486_p1), %p1384_p2, %p1383_p9 }
  0xb0   : > { %p1386_p10 = pnand (%p486_p1), %p1385_p7, %p1379_p0 }
 0x109   : >> { %v522_v14 = vpop.trf.xlu0 }
 0x10a   : >> { %1131 = vmatprep.mubr.msk.bf16.mxu0 %vm530_vm2, %v522_v14 }
 0x10d   : >> { %v523_v15 = vpop.trf.xlu0 }
 0x10e   : >> { %1132 = vmatmul.mubr.msk.bf16.vlgmr.msra.gmra.mrb[0].mxu0 %vm530_vm2, %v523_v15 }
 0x111   : >> { %v524_v16 = vpop.trf.xlu0 }
 0x112   : >> { %1135 = vmatprep.mubr.msk.bf16.mxu0 %vm530_vm2, %v524_v16 }
 0x115   : >> { %v525_v17 = vpop.trf.xlu0 }
 0x116   : >> { %1136 = vmatmul.mubr.msk.bf16.gmra.mrb[4].mxu0 %vm530_vm2, %v525_v17 }
 0x1e1   : >> { %v1133_v19 = vpop.f32.mrb[0].mxu0 }
 0x1e2   : >> { %v577_v20 = vpop.f32.mrb[1].mxu0  ;;  %v613_v24 = vsel %vm403_vm1, %v1133_v19, -inf }
 0x1e3   : >> { %v1134_v21 = vpop.f32.mrb[2].mxu0  ;;  %v611_v27 = vsel %vm403_vm1, %v577_v20, -inf }
 0x1e4   : >> { %v580_v22 = vpop.f32.mrb[3].mxu0  ;;  %v614_v31 = vsel %vm403_vm1, %v1134_v21, -inf }
 0x1e5   : >> { %v612_v35 = vsel %vm403_vm1, %v580_v22, -inf }
 0x1e9   : >> { %v1137_v23 = vpop.f32.mrb[4].mxu0 }
 0x1ea   : >> { %v619_v25 = vsel %vm403_vm1, %v1137_v23, -inf  ;;  %v593_v26 = vpop.f32.mrb[5].mxu0 }
 0x1eb   : >> { %v620_v28 = vmax.f32 %v613_v24, %v619_v25  ;;  %v615_v29 = vsel %vm403_vm1, %v593_v26, -inf  ;;  %v1138_v30 = vpop.f32.mrb[6].mxu0 }
 0x1ec   : >> { %v616_v32 = vmax.f32 %v611_v27, %v615_v29  ;;  %v621_v33 = vsel %vm403_vm1, %v1138_v30, -inf  ;;  %v596_v34 = vpop.f32.mrb[7].mxu0 }
 0x1ed   : >> { %v622_v36 = vmax.f32 %v614_v31, %v621_v33  ;;  %v617_v37 = vsel %vm403_vm1, %v596_v34, -inf }
 0x1ee   : >> { %v618_v38 = vmax.f32 %v612_v35, %v617_v37 }
 0x1ef   : >> { %v624_v39 = vmax.f32 %v620_v28, %v622_v36 }
 0x1f0   : >> { %v623_v40 = vmax.f32 %v616_v32, %v618_v38  ;;  %v1265_v38 = vld [vmem:[%s1795_s10] sm:$0xff]  }
 0x1f2   : >> { %v625_v41 = vmax.f32 %v623_v40, %v624_v39 }
 0x1f4   : >> { %v626_v42 = vrot.slane %v625_v41, 4 }
 0x1f6   : >> { %v627_v43 = vmax.f32 %v625_v41, %v626_v42 }
 0x1f8   : >> { %v628_v45 = vrot.slane %v627_v43, 2 }
 0x1fa   : >> { %v629_v46 = vmax.f32 %v627_v43, %v628_v45  ;;  %v667_v43 = vld [vmem:[%s666_s12] sm:$0x1] }
 0x1fc   : >> { %v630_v48 = vrot.slane %v629_v46, 1 }
 0x1fe   : >> { %v631_v50 = vmax.f32 %v629_v46, %v630_v48  ;;  %v696_v48 = vld [vmem:[%s694_s14 + $0x8] sm:$0xff] }
 0x200   : >> { %v632_v52 = vmax.f32 %v609_v49, %v631_v50 }
 0x202   : >> { %v640_v53 = vrot.slane %v632_v52, %v1807_v51  ;;  %766 = vst.msk [vmem:[%s608_s0] sm:$0x1] %vm394_vm0, %v632_v52  ;;  %v633_v3 = vsub.f32 %v609_v49, %v632_v52 }
 0x204   : >> { %v644_v54 = vsub.f32 %v1133_v19, %v640_v53  ;;  %v647_v55 = vsub.f32 %v596_v34, %v640_v53  ;;  %v642_v56 = vsub.f32 %v577_v20, %v640_v53  ;;  %v643_v57 = vsub.f32 %v580_v22, %v640_v53 }
 0x205   : >> { %v645_v58 = vsub.f32 %v1134_v21, %v640_v53  ;;  %v646_v59 = vsub.f32 %v593_v26, %v640_v53  ;;  %v648_v60 = vsub.f32 %v1137_v23, %v640_v53  ;;  %v649_v61 = vsub.f32 %v1138_v30, %v640_v53 }
 0x206   : >> { %v660_v62 = vmul.f32 1.442695, %v647_v55  ;;  %v650_v63 = vmul.f32 1.442695, %v642_v56  ;;  %v654_v0 = vmul.f32 1.442695, %v644_v54 }
 0x207   : >> { %v652_v1 = vmul.f32 1.442695, %v643_v57  ;;  %v656_v2 = vmul.f32 1.442695, %v645_v58  ;;  %v658_v4 = vmul.f32 1.442695, %v646_v59 }
 0x208   : >> { %1266 = vpow2.f32 %v660_v62  ;;  %v662_v5 = vmul.f32 1.442695, %v648_v60  ;;  %v664_v6 = vmul.f32 1.442695, %v649_v61  ;;  %v634_v7 = vmul.f32 1.442695, %v633_v3 }
 0x209   : >> { %1268 = vpow2.f32 %v650_v63 }
 0x20a   : >> { %1270 = vpow2.f32 %v652_v1 }
 0x20b   : >> { %1272 = vpow2.f32 %v654_v0 }
 0x20c   : >> { %1274 = vpow2.f32 %v656_v2 }
 0x20d   : >> { %1276 = vpow2.f32 %v658_v4 }
 0x20e   : >> { %1278 = vpow2.f32 %v662_v5 }
 0x20f   : >> { %1280 = vpow2.f32 %v664_v6 }
 0x210   : >> { %1282 = vpow2.f32 %v634_v7 }
 0x212   : >> { %v1267_v8 = vpop.eup %1266 }
 0x213   : >> { %v1269_v9 = vpop.eup %1268  ;;  %v678_v32 = vsel %vm403_vm1, %v1267_v8, 0.0 }
 0x214   : >> { %v1271_v10 = vpop.eup %1270  ;;  %v669_v11 = vsel %vm403_vm1, %v1269_v9, 0.0 }
 0x215   : >> { %v1273_v12 = vpop.eup %1272  ;;  %v670_v13 = vsel %vm403_vm1, %v1271_v10, 0.0  ;;  %v709_v14 = vpack.c.bf16 %v1271_v10, %v1269_v9 }
 0x216   : >> { %v1275_v15 = vpop.eup %1274  ;;  %v671_v16 = vadd.f32 %v670_v13, %v669_v11  ;;  %v672_v19 = vsel %vm403_vm1, %v1273_v12, 0.0 }
 0x217   : >> { %v1277_v17 = vpop.eup %1276  ;;  %1140 = vmatpush3.bf16.msra.mxu1 %v709_v14  ;;  %v710_v20 = vpack.c.bf16 %v1275_v15, %v1273_v12  ;;  %v674_v25 = vsel %vm403_vm1, %v1275_v15, 0.0 }
 0x218   : >> { %v1279_v21 = vpop.eup %1278  ;;  %v673_v22 = vadd.f32 %v672_v19, %v671_v16  ;;  %1141 = vmatprep.subr.bf16.mxu1 %v1491_v18  ;;  %v711_v23 = vpack.c.bf16 %v1267_v8, %v1277_v17  ;;  %v676_v29 = vsel %vm403_vm1, %v1277_v17, 0.0 }
 0x219   : >> { %v1281_v24 = vpop.eup %1280  ;;  %v680_v34 = vsel %vm403_vm1, %v1279_v21, 0.0 }
 0x21a   : >> { %v1283_v26 = vpop.eup %1282  ;;  %v675_v27 = vadd.f32 %v674_v25, %v673_v22  ;;  %v712_v28 = vpack.c.bf16 %v1281_v24, %v1279_v21  ;;  %v682_v36 = vsel %vm403_vm1, %v1281_v24, 0.0 }
 0x21b   : >> { %1142 = vmatpush3.bf16.msra.mxu1 %v710_v20  ;;  %v701_v30 = vrot.slane %v1283_v26, %v1807_v51  ;;  %v668_v46 = vmul.f32 %v1283_v26, %v667_v43 }
 0x21c   : >> { %v677_v31 = vadd.f32 %v676_v29, %v675_v27  ;;  %1143 = vmatprep.subr.bf16.mxu1 %v1491_v18 }
 0x21d   : >> { %v704_v54 = vmul.f32 %v701_v30, %v696_v48 }
 0x21e   : >> { %v679_v33 = vadd.f32 %v678_v32, %v677_v31 }
 0x21f   : >> { %1144 = vmatpush3.bf16.msra.mxu1 %v711_v23 }
 0x220   : >> { %1145 = vmatprep.subr.bf16.mxu1 %v1491_v18  ;;  %v681_v35 = vadd.f32 %v680_v34, %v679_v33  ;;  %v695_v18 = vld [vmem:[%s694_s14] sm:$0xff] }
 0x221   : >> { %v703_v49 = vmul.f32 %v701_v30, %v695_v18 }
 0x222   : >> { %v683_v37 = vadd.f32 %v682_v36, %v681_v35 }
 0x223   : >> { %1146 = vmatpush3.bf16.msra.mxu1 %v712_v28 }
 0x224   : >> { %v684_v39 = vrot.slane %v683_v37, 4 }
 0x226   : >> { %v685_v40 = vadd.f32 %v684_v39, %v683_v37  ;;  %1148 = vmatmul.mubr.msk.bf16.vlgmr.msra.gmra.mrb[0].mxu1 %vm403_vm1, %v1265_v38 }
 0x228   : >> { %v686_v41 = vrot.slane %v685_v40, 2 }
 0x22a   : >> { %v687_v42 = vadd.f32 %v686_v41, %v685_v40 }
 0x22c   : >> { %v688_v44 = vrot.slane %v687_v42, 1 }
 0x22e   : >> { %v689_v45 = vadd.f32 %v688_v44, %v687_v42 }
 0x230   : >> { %v690_v47 = vadd.f32 %v689_v45, %v668_v46 }
 0x232   : >> { %692 = vst.msk [vmem:[%s666_s12] sm:$0x1] %vm394_vm0, %v690_v47 }
 0x239   : > { %v770_v58 = vld [vmem:[#allocation4] sm:$0x1] (%p486_p1)  ;;  %v771_v59 = vld [vmem:[#allocation4 + $0x1] sm:$0x1] (%p486_p1)  ;;  %v772_v60 = vld [vmem:[#allocation4 + $0x2] sm:$0x1] (%p486_p1) }
 0x23a   : > { %1284 = vrcp.f32 (%p486_p1), %v770_v58  ;;  %v773_v61 = vld [vmem:[#allocation4 + $0x3] sm:$0x1] (%p486_p1) }
 0x23b   : > { %1286 = vrcp.f32 (%p486_p1), %v771_v59 }
 0x23c   : > { %1288 = vrcp.f32 (%p486_p1), %v772_v60 }
 0x23d   : > { %1290 = vrcp.f32 (%p486_p1), %v773_v61 }
 0x244   : > { %v1285_v62 = vpop.eup (%p486_p1), %1284 }
 0x245   : > { %v1287_v1 = vpop.eup (%p486_p1), %1286  ;;  %v793_v2 = vrot.slane (%p486_p1), %v1285_v62, %v1807_v51 }
 0x246   : > { %v1289_v5 = vpop.eup (%p486_p1), %1288  ;;  %v797_v6 = vrot.slane (%p486_p1), %v1287_v1, %v1807_v51 }
 0x247   : > { %v1291_v9 = vpop.eup (%p486_p1), %1290  ;;  %v801_v12 = vrot.slane (%p486_p1), %v1289_v5, %v1807_v51 }
 0x248   : > { %v805_v17 = vrot.slane (%p486_p1), %v1291_v9, %v1807_v51 }
 0x2f8   : > { %488 = sbr.rel (!%p486_p1) target bundleno = 160 (0xa0), region = 136 }
 0x2f9   : >> { %v755_v50 = vpop.f32.mrb[0].mxu1 }
 0x2fa   : >> { %v762_v52 = vadd.f32 %v755_v50, %v703_v49  ;;  %v1149_v53 = vpop.f32.mrb[1].mxu1 }
 0x2fb   : >> { %v758_v55 = vpop.f32.mrb[2].mxu1 }
 0x2fc   : >> { %764 = vst.msk [vmem:[%s694_s14] sm:$0xff] %vm403_vm1, %v762_v52  ;;  %v763_v56 = vadd.f32 %v758_v55, %v704_v54  ;;  %v1150_v57 = vpop.f32.mrb[3].mxu1 }
 0x2fe   : >> { %765 = vst.msk [vmem:[%s694_s14 + $0x8] sm:$0xff] %vm403_vm1, %v763_v56 }
 0x305   : > { %v778_v63 = vld [vmem:[#allocation5] sm:$0xff]  ;;  %v779_v0 = vld [vmem:[#allocation5 + $0x8] sm:$0xff]  ;;  %v780_v3 = vld [vmem:[#allocation5 + $0x10] sm:$0xff] }
 0x306   : > { %v781_v4 = vld [vmem:[#allocation5 + $0x18] sm:$0xff]  ;;  %v782_v7 = vld [vmem:[#allocation5 + $0x20] sm:$0xff]  ;;  %v783_v8 = vld [vmem:[#allocation5 + $0x28] sm:$0xff]  ;;  %v810_v10 = vmul.f32 %v793_v2, %v778_v63  ;;  %v811_v11 = vmul.f32 %v793_v2, %v779_v0  ;;  %v812_v15 = vmul.f32 %v797_v6, %v780_v3 }
 0x307   : > { %v784_v13 = vld [vmem:[#allocation5 + $0x30] sm:$0xff]  ;;  %v785_v14 = vld [vmem:[#allocation5 + $0x38] sm:$0xff]  ;;  %v813_v16 = vmul.f32 %v797_v6, %v781_v4  ;;  %v814_v21 = vmul.f32 %v801_v12, %v782_v7  ;;  %v815_v22 = vmul.f32 %v801_v12, %v783_v8 }
 0x308   : > { %v1107_v19 = vpack.c.bf16 %v810_v10, %v810_v10  ;;  %v1108_v20 = vpack.c.bf16 %v811_v11, %v811_v11  ;;  %v1109_v23 = vpack.c.bf16 %v812_v15, %v812_v15  ;;  %v816_v25 = vmul.f32 %v805_v17, %v784_v13 }
 0x309   : > { %v1110_v24 = vpack.c.bf16 %v813_v16, %v813_v16  ;;  %v817_v26 = vmul.f32 %v805_v17, %v785_v14  ;;  %v1111_v51 = vpack.c.bf16 %v814_v21, %v814_v21  ;;  %v1112_v27 = vpack.c.bf16 %v815_v22, %v815_v22 }
 0x30a   : > { %851 = vst.msk [vmem:[%s1778_s21] sm:$0xf] %vm850_vm4, %v1107_v19  ;;  %852 = vst.msk [vmem:[%s1778_s21 + $0x4] sm:$0xf] %vm850_vm4, %v1108_v20  ;;  %v1113_v28 = vpack.c.bf16 %v816_v25, %v816_v25 }
 0x30b   : > { %853 = vst.msk [vmem:[%s1778_s21 + $0x8] sm:$0xf] %vm850_vm4, %v1109_v23  ;;  %854 = vst.msk [vmem:[%s1778_s21 + $0xc] sm:$0xf] %vm850_vm4, %v1110_v24  ;;  %v1114_v29 = vpack.c.bf16 %v817_v26, %v817_v26 }
 0x30c   : > { %855 = vst.msk [vmem:[%s1778_s21 + $0x10] sm:$0xf] %vm850_vm4, %v1111_v51  ;;  %856 = vst.msk [vmem:[%s1778_s21 + $0x14] sm:$0xf] %vm850_vm4, %v1112_v27 }
 0x30d   : > { %857 = vst.msk [vmem:[%s1778_s21 + $0x18] sm:$0xf] %vm850_vm4, %v1113_v28  ;;  %858 = vst.msk [vmem:[%s1778_s21 + $0x1c] sm:$0xf] %vm850_vm4, %v1114_v29 }
 0x30e   : > { %1389 = shalt.err (!%p1386_p10)
}
 0x30f   : > { %s1390_s21 = scalar_lea.hbm %s1846_s29, 512  ;;  %s1394_s11 = scalar_lea.hbm %s1913_s4, 1024 }
 0x310   : > { %p1391_p6 = scmp.ne.s32.totalorder %s1846_s29, %s1390_s21  ;;  %p1395_p13 = scmp.lt.u32.totalorder %s1846_s29, %s1913_s4 }
 0x311   : > { %p1396_p1 = scmp.lt.u32.totalorder %s1394_s11, %s1390_s21  ;;  %p1398_p11 = scmp.lt.u32.totalorder %s1390_s21, %s1846_s29 }
 0x312   : > { %p1392_p12 = pnand %p1391_p6, %p1939_p8 }
 0x313   : > { %p1397_p5 = por %p1396_p1, %p1395_p13 }
 0x314   : > { %p1393_p4 = pneg %p1392_p12 }
 0x315   : > { %p1399_p0 = por %p1398_p11, %p1397_p5 }
 0x317   : > { %p1400_p9 = pnand %p1399_p0, %p1393_p4 }
 0x319   : > { %1403 = shalt.err (!%p1400_p9)
}
 0x31a   : > { %s1494_s10 = smov 64   ;;  %s1495_s0 = smov 4  }
 0x31b   : > { %1168 = dma.vmem_to_hbm [thread:$0]  (%p1939_p8), %s1848_s22, 512, %s1846_s29, %s860_s5, %s1494_s10, %s1494_s10, %s1495_s0  }
 0x31c PF: > { %s891_s12 = sand.u32 1, %s1450_s15   ;;  %p1940_p2 = scmp.ne.s32.totalorder %s1928_s30, 0 }
 0x31d   : > { %s892_s14 = scalar_lea.sflag [#allocation8], %s891_s12 }
 0x31e   : > { %p1175_p7 = pnand %p1048_p3, %p1940_p2 }
 0x320   : > { %1445 = dma.done.wait (!%p1175_p7), %s892_s14, 512  }
 0x321   : > { %1447 = vsyncadd (!%p1175_p7), %s892_s14, 4294966784  ;;  %s24_s20 = sadd.s32 1, %s1470_s20   ;;  %s1941_s8 = sld [smem:[#allocation23_spill]] }
 0x322   : > { %p21_p10 = scmp.ge.s32.totalorder %s24_s20, 4   ;;  %s1942_s28 = sld [smem:[#allocation22_spill]] }
 0x323   : > { %s1943_s15 = smov %s1454_s16  ;;  %s1944_s16 = smov %s1458_s17 }
 0x324   : > { %s1946_s18 = smov %s1466_s19  ;;  %23 = sbr.rel (!%p21_p10) target bundleno = 12 (0xc), region = 147 }
 0x327   : > { %s1945_s17 = smov %s1941_s8 }
 0x328   : > { %s1947_s19 = smov %s1942_s28 }
 0x32b   :  { %897 = vsyncpa [#allocation7], 1 }
 0x32c   :  { %899 = vsyncpa [#allocation7 + $0x1], 1 }
 0x32d   :  { %900 = vsyncpa [#allocation10], 1 }
 0x32e   :  { %902 = vsyncpa [#allocation10 + $0x1], 1 }
 0x32f   :  { %903 = vsyncpa [#allocation13], 1 }
 0x330   :  { %904 = vsyncpa [#allocation8], 1 }
 0x331   :  { %906 = vsyncpa [#allocation8 + $0x1], 1 }

</bundles_post_ra>
